<compile_context>
chip_gen: v6e
topology: v6e:2x2x1
jax: 0.10.0
libtpu: 0.0.40
codegen_flags: <defaults>
</compile_context>

<pallas_src>
import math

import jax
import jax.numpy as jnp
from jax.experimental import pallas as pl
from jax.experimental.pallas import tpu as pltpu

# ---------------- config (small test shapes; production uses D=512 etc.) ----
N_MODELS = 2
B = 2            # batch
S = 8            # source length
T = 8            # target length
D = 32           # d_model
H = 2            # attention heads
DH = D // H
DFF = 64         # feed-forward hidden
V_FORMULA = 50   # formula (source token) vocab
V_TGT = 40       # target vocab
SPEC_DIM = 16    # spectra feature dim consumed by src_embed
NEG_INF = -1e9

# ---- packed-slab row offsets (all sublane-tile aligned for the bf16 slabs) ----
# wide slab: (2*D, 3*D) bf16
WR_ENC_WQKV = 0
WR_DEC_SA_WQKV = D
WIDE_ROWS = 2 * D
# mid slab: (3*D, 2*D) bf16
MR_ENC_FFW1 = 0
MR_DEC_CA_WKV = D
MR_DEC_FFW1 = 2 * D
MID_ROWS = 3 * D
# narrow slab: (272, D) bf16
NR_SPEC_W = 0
NR_ENC_WO = NR_SPEC_W + SPEC_DIM
NR_ENC_FFW2 = NR_ENC_WO + D
NR_DEC_SA_WO = NR_ENC_FFW2 + DFF
NR_DEC_CA_WQ = NR_DEC_SA_WO + D
NR_DEC_CA_WO = NR_DEC_CA_WQ + D
NR_DEC_FFW2 = NR_DEC_CA_WO + D
NARROW_ROWS = NR_DEC_FFW2 + DFF
# vector slab: (26, 3*D) f32 — biases and LayerNorm gamma/beta rows
VR_SPEC_B = 0
VR_ENC_LN1 = 1        # gamma @ row, beta @ row+1
VR_ENC_BQKV = 3
VR_ENC_BO = 4
VR_ENC_LN2 = 5
VR_ENC_FFB1 = 7
VR_ENC_FFB2 = 8
VR_ENC_LNF = 9
VR_DEC_LN1 = 11
VR_DEC_SA_BQKV = 13
VR_DEC_SA_BO = 14
VR_DEC_LN2 = 15
VR_DEC_CA_BQ = 17
VR_DEC_CA_BKV = 18
VR_DEC_CA_BO = 19
VR_DEC_LN3 = 20
VR_DEC_FFB1 = 22
VR_DEC_FFB2 = 23
VR_DEC_LNF = 24
N_VEC_ROWS = 26


# ---------------- the fused kernel (one grid step == one ensemble member) ----
def _fused_forward_kernel(
    src_mask_ref,      # (B, 1, S) f32, 1.0 = attend  (shared)
    tgt_mask_ref,      # (B, T, T) f32                (shared)
    spec_ref,          # (B*S, SPEC_DIM) f32          (shared)
    src_emb_ref,       # (1, B*S, D) f32  tok_emb*sqrt(D) + PE   (per model)
    tgt_emb_ref,       # (1, B*T, D) f32                          (per model)
    w_wide_ref,        # (1, 2*D, 3*D) bf16   QKV projections
    w_mid_ref,         # (1, 3*D, 2*D) bf16   FFN-in / cross KV
    w_narrow_ref,      # (1, NARROW_ROWS, D) bf16  spec/Wo/FFN-out/Wq
    vec_ref,           # (1, N_VEC_ROWS, 3*D) f32  biases + LN params
    out_ref,           # (1, B*T, D) f32
):
    def mm(x, w):
        # activations cast to bf16 (weights already bf16), f32 accumulation.
        return jnp.dot(x.astype(jnp.bfloat16), w,
                       preferred_element_type=jnp.float32)

    def vec(row, width=D):
        return vec_ref[0, row:row + 1, 0:width]          # (1, width) f32

    def w_wide(row, rows=D):
        return w_wide_ref[0, row:row + rows, :]

    def w_mid(row, rows=D):
        return w_mid_ref[0, row:row + rows, :]

    def w_nar(row, rows=D):
        return w_narrow_ref[0, row:row + rows, :]

    def ln(x, row):
        mu = jnp.mean(x, axis=-1, keepdims=True)
        var = jnp.mean(jnp.square(x - mu), axis=-1, keepdims=True)
        y = (x - mu) * jax.lax.rsqrt(var + 1e-6)
        return y * vec(row) + vec(row + 1)

    def softmax(s):
        s = s - jnp.max(s, axis=-1, keepdims=True)
        p = jnp.exp(s)
        return p * pl.reciprocal(jnp.sum(p, axis=-1, keepdims=True), approx=True)

    def mha(q, k, v, bias, wo, bo, lq, lk):
        # q:(B*lq,D) k/v:(B*lk,D)  bias:(B,1,lk) or (B,lq,lk) additive
        # 1/sqrt(DH) already folded into the Q projection weights.
        q3 = q.reshape(B, lq, D).astype(jnp.bfloat16)     # cast once per sublayer
        k3 = k.reshape(B, lk, D).astype(jnp.bfloat16)
        v3 = v.reshape(B, lk, D).astype(jnp.bfloat16)
        heads = []
        for h in range(H):                                 # H=2, unrolled
            sl = slice(h * DH, (h + 1) * DH)
            s = jnp.einsum("bqd,bkd->bqk", q3[..., sl], k3[..., sl],
                           preferred_element_type=jnp.float32)   # (B,lq,lk)
            p = softmax(s + bias)
            heads.append(jnp.einsum("bqk,bkd->bqd", p.astype(jnp.bfloat16),
                                    v3[..., sl],
                                    preferred_element_type=jnp.float32))
        # fuse head outputs -> one output projection matmul
        o = jnp.concatenate(heads, axis=-1).reshape(B * lq, D)
        return mm(o, wo) + bo

    def self_attn(x, bias, wqkv, bqkv_row, wo, bo_row, seq):
        qkv = mm(x, wqkv) + vec(bqkv_row, 3 * D)          # fused QKV (B*seq, 3D)
        return mha(qkv[:, 0:D], qkv[:, D:2 * D], qkv[:, 2 * D:3 * D],
                   bias, wo, vec(bo_row), seq, seq)

    def ffn(x, w1, b1_row, w2, b2_row):
        h1 = jnp.maximum(mm(x, w1) + vec(b1_row, DFF), 0.0)
        return mm(h1, w2) + vec(b2_row)

    neg = jnp.float32(NEG_INF)
    src_bias = jnp.where(src_mask_ref[...] > 0.5, 0.0, neg)   # (B,1,S)
    tgt_bias = jnp.where(tgt_mask_ref[...] > 0.5, 0.0, neg)   # (B,T,T)

    # -------- encoder (pre-LN single layer + final LayerNorm) --------
    x = (src_emb_ref[0]
         + mm(spec_ref[...], w_nar(NR_SPEC_W, SPEC_DIM))
         + vec(VR_SPEC_B))
    x = x + self_attn(ln(x, VR_ENC_LN1), src_bias,
                      w_wide(WR_ENC_WQKV), VR_ENC_BQKV,
                      w_nar(NR_ENC_WO), VR_ENC_BO, S)
    x = x + ffn(ln(x, VR_ENC_LN2),
                w_mid(MR_ENC_FFW1), VR_ENC_FFB1,
                w_nar(NR_ENC_FFW2, DFF), VR_ENC_FFB2)
    mem = ln(x, VR_ENC_LNF)                                # (B*S, D)

    # -------- decoder (pre-LN single layer + final LayerNorm) --------
    y = tgt_emb_ref[0]
    y = y + self_attn(ln(y, VR_DEC_LN1), tgt_bias,
                      w_wide(WR_DEC_SA_WQKV), VR_DEC_SA_BQKV,
                      w_nar(NR_DEC_SA_WO), VR_DEC_SA_BO, T)

    yn = ln(y, VR_DEC_LN2)
    q = mm(yn, w_nar(NR_DEC_CA_WQ)) + vec(VR_DEC_CA_BQ)    # (B*T, D), pre-scaled
    kv = mm(mem, w_mid(MR_DEC_CA_WKV)) + vec(VR_DEC_CA_BKV, 2 * D)
    y = y + mha(q, kv[:, 0:D], kv[:, D:2 * D], src_bias,
                w_nar(NR_DEC_CA_WO), vec(VR_DEC_CA_BO), T, S)

    y = y + ffn(ln(y, VR_DEC_LN3),
                w_mid(MR_DEC_FFW1), VR_DEC_FFB1,
                w_nar(NR_DEC_FFW2, DFF), VR_DEC_FFB2)
    out_ref[0] = ln(y, VR_DEC_LNF).astype(out_ref.dtype)


# ---------------- BlockSpec helpers ----------------
def _model_spec(shape):
    """Array with a leading ensemble-model axis; one model per grid step."""
    shape = tuple(int(s) for s in shape)
    zeros = (0,) * len(shape)
    return pl.BlockSpec((1,) + shape, lambda m: (m,) + zeros)


def _shared_spec(shape):
    """Array shared by all ensemble members (same block every grid step)."""
    shape = tuple(int(s) for s in shape)
    zeros = (0,) * len(shape)
    return pl.BlockSpec(shape, lambda m: zeros)


# ---------------- plain-JAX glue ----------------
def positional_encoding(length, d_model):
    pos = jnp.arange(length)[:, None].astype(jnp.float32)
    div = jnp.exp(jnp.arange(0, d_model, 2).astype(jnp.float32)
                  * (-math.log(10000.0) / d_model))
    pe = jnp.zeros((length, d_model), jnp.float32)
    pe = pe.at[:, 0::2].set(jnp.sin(pos * div))
    pe = pe.at[:, 1::2].set(jnp.cos(pos * div))
    return pe


def ensemble_forward(packed, formula, spec, src_mask, tgt, tgt_mask):
    """EnsembleModel.forward: decode(encode(formula, spec, src_mask), tgt, ...).

    `packed` holds bf16 weight slabs / f32 vector slab stacked along N_MODELS.
    Returns the list of per-model decoder outputs (generator is not applied).
    """
    pe_src = positional_encoding(S, D)     # EnsembleEncoder.src_position
    pe_tgt = positional_encoding(T, D)     # per-model tgt_embed's PE

    # Token-embedding gathers + PE adds stay in plain JAX (no Pallas gather win).
    src_emb = (jnp.take(packed["src_tok_emb"], formula, axis=1).astype(jnp.float32)
               * math.sqrt(D) + pe_src[None, None]).reshape(N_MODELS, B * S, D)
    tgt_emb = (jnp.take(packed["tgt_tok_emb"], tgt, axis=1).astype(jnp.float32)
               * math.sqrt(D) + pe_tgt[None, None]).reshape(N_MODELS, B * T, D)

    spec_flat = spec.reshape(B * S, SPEC_DIM).astype(jnp.float32)
    src_maskf = src_mask.astype(jnp.float32)     # (B, 1, S)
    tgt_maskf = tgt_mask.astype(jnp.float32)     # (B, T, T)

    in_specs = [
        _shared_spec((B, 1, S)),
        _shared_spec((B, T, T)),
        _shared_spec((B * S, SPEC_DIM)),
        _model_spec((B * S, D)),
        _model_spec((B * T, D)),
        _model_spec((WIDE_ROWS, 3 * D)),
        _model_spec((MID_ROWS, 2 * D)),
        _model_spec((NARROW_ROWS, D)),
        _model_spec((N_VEC_ROWS, 3 * D)),
    ]

    out = pl.pallas_call(
        _fused_forward_kernel,
        out_shape=jax.ShapeDtypeStruct((N_MODELS, B * T, D), jnp.float32),
        grid=(N_MODELS,),
        in_specs=in_specs,
        out_specs=_model_spec((B * T, D)),
        compiler_params=pltpu.CompilerParams(
            dimension_semantics=("parallel",),     # models shard across TCs on v7x
            # TODO(synk): re-derive for production D=512/multi-layer so the
            # per-model weight slabs x2 buffering fit v7x's 64 MiB VMEM.
            vmem_limit_bytes=32 * 1024 * 1024),
    )(src_maskf, tgt_maskf, spec_flat, src_emb, tgt_emb,
      packed["w_wide"], packed["w_mid"], packed["w_narrow"], packed["vec"])

    dec = out.reshape(N_MODELS, B, T, D)
    return [dec[m] for m in range(N_MODELS)]


# ---------------- offline parameter packing (runs once, outside the kernel) ----
def pack_ensemble_params(per_model):
    """Fold attention scale into Wq/bq, pre-cast weights to bf16, and pack the
    31 per-model tensors into 4 stacked slabs + 2 embedding tables."""
    scale = 1.0 / math.sqrt(DH)
    wide, mid, narrow, vecs, src_tabs, tgt_tabs = [], [], [], [], [], []

    def pad96(v):
        return jnp.pad(v, ((0, 0), (0, 3 * D - v.shape[1])))

    for p in per_model:
        enc_wqkv = p["enc_wqkv"].at[:, :D].multiply(scale)
        enc_bqkv = p["enc_bqkv"].at[:, :D].multiply(scale)
        dec_sa_wqkv = p["dec_sa_wqkv"].at[:, :D].multiply(scale)
        dec_sa_bqkv = p["dec_sa_bqkv"].at[:, :D].multiply(scale)
        dec_ca_wq = p["dec_ca_wq"] * scale
        dec_ca_bq = p["dec_ca_bq"] * scale

        wide.append(jnp.concatenate([enc_wqkv, dec_sa_wqkv], axis=0))
        mid.append(jnp.concatenate(
            [p["enc_ffw1"], p["dec_ca_wkv"], p["dec_ffw1"]], axis=0))
        narrow.append(jnp.concatenate(
            [p["spec_w"], p["enc_wo"], p["enc_ffw2"], p["dec_sa_wo"],
             dec_ca_wq, p["dec_ca_wo"], p["dec_ffw2"]], axis=0))
        vecs.append(jnp.concatenate([pad96(v) for v in [
            p["spec_b"], p["enc_ln1"], enc_bqkv, p["enc_bo"], p["enc_ln2"],
            p["enc_ffb1"], p["enc_ffb2"], p["enc_lnf"], p["dec_ln1"],
            dec_sa_bqkv, p["dec_sa_bo"], p["dec_ln2"], dec_ca_bq,
            p["dec_ca_bkv"], p["dec_ca_bo"], p["dec_ln3"], p["dec_ffb1"],
            p["dec_ffb2"], p["dec_lnf"]]], axis=0))
        src_tabs.append(p["src_tok_emb"])
        tgt_tabs.append(p["tgt_tok_emb"])

    packed = {
        "w_wide": jnp.stack(wide).astype(jnp.bfloat16),
        "w_mid": jnp.stack(mid).astype(jnp.bfloat16),
        "w_narrow": jnp.stack(narrow).astype(jnp.bfloat16),
        "vec": jnp.stack(vecs).astype(jnp.float32),
        "src_tok_emb": jnp.stack(src_tabs).astype(jnp.bfloat16),
        "tgt_tok_emb": jnp.stack(tgt_tabs).astype(jnp.bfloat16),
    }
    assert packed["w_wide"].shape == (N_MODELS, WIDE_ROWS, 3 * D)
    assert packed["w_mid"].shape == (N_MODELS, MID_ROWS, 2 * D)
    assert packed["w_narrow"].shape == (N_MODELS, NARROW_ROWS, D)
    assert packed["vec"].shape == (N_MODELS, N_VEC_ROWS, 3 * D)
    return packed


# ---------------- deterministic parameter init ----------------
def init_model_params(key):
    keys = iter(jax.random.split(key, 64))

    def w(shape, scale=0.05):
        return jax.random.normal(next(keys), shape, jnp.float32) * scale

    def zeros(shape):
        return jnp.zeros(shape, jnp.float32)

    def ln_params():
        return jnp.stack([jnp.ones((D,), jnp.float32),
                          jnp.zeros((D,), jnp.float32)])   # [gamma; beta]

    return {
        "src_tok_emb": w((V_FORMULA, D)),
        "tgt_tok_emb": w((V_TGT, D)),
        "spec_w": w((SPEC_DIM, D)), "spec_b": zeros((1, D)),
        "enc_ln1": ln_params(),
        "enc_wqkv": w((D, 3 * D)), "enc_bqkv": zeros((1, 3 * D)),
        "enc_wo": w((D, D)), "enc_bo": zeros((1, D)),
        "enc_ln2": ln_params(),
        "enc_ffw1": w((D, DFF)), "enc_ffb1": zeros((1, DFF)),
        "enc_ffw2": w((DFF, D)), "enc_ffb2": zeros((1, D)),
        "enc_lnf": ln_params(),
        "dec_ln1": ln_params(),
        "dec_sa_wqkv": w((D, 3 * D)), "dec_sa_bqkv": zeros((1, 3 * D)),
        "dec_sa_wo": w((D, D)), "dec_sa_bo": zeros((1, D)),
        "dec_ln2": ln_params(),
        "dec_ca_wq": w((D, D)), "dec_ca_bq": zeros((1, D)),
        "dec_ca_wkv": w((D, 2 * D)), "dec_ca_bkv": zeros((1, 2 * D)),
        "dec_ca_wo": w((D, D)), "dec_ca_bo": zeros((1, D)),
        "dec_ln3": ln_params(),
        "dec_ffw1": w((D, DFF)), "dec_ffb1": zeros((1, DFF)),
        "dec_ffw2": w((DFF, D)), "dec_ffb2": zeros((1, D)),
        "dec_lnf": ln_params(),
    }


if __name__ == "__main__":
    root = jax.random.PRNGKey(0)
    k_params, k_formula, k_spec, k_tgt = jax.random.split(root, 4)
    per_model = [init_model_params(kk)
                 for kk in jax.random.split(k_params, N_MODELS)]
    packed = pack_ensemble_params(per_model)   # one-time offline packing

    formula = jax.random.randint(k_formula, (B, S), 0, V_FORMULA)
    spec = jax.random.normal(k_spec, (B, S, SPEC_DIM), jnp.float32)
    tgt = jax.random.randint(k_tgt, (B, T), 0, V_TGT)

    # src_mask (B, 1, S): True where source position is valid
    src_valid = jnp.arange(S)[None, :] < jnp.array([S, S - 2])[:, None]
    src_mask = src_valid[:, None, :]
    # tgt_mask (B, T, T): causal mask
    causal = jnp.tril(jnp.ones((T, T), dtype=bool))
    tgt_mask = jnp.broadcast_to(causal[None], (B, T, T))

    fwd = jax.jit(ensemble_forward)
    dec_outs = fwd(packed, formula, spec, src_mask, tgt, tgt_mask)

    for o in dec_outs:
        jax.block_until_ready(o)
        assert o.shape == (B, T, D), o.shape
        assert bool(jnp.all(jnp.isfinite(o)))
    assert len(dec_outs) == N_MODELS
    print("KERNEL_OK")
</pallas_src>

<mosaic_0001>
module attributes {stable_mosaic.version = 11 : i64} {
  func.func @_fused_forward_kernel(%arg0: i32, %arg1: memref<2x1x8xf32, #tpu.memory_space<vmem>>, %arg2: memref<2x8x8xf32, #tpu.memory_space<vmem>>, %arg3: memref<16x16xf32, #tpu.memory_space<vmem>>, %arg4: memref<1x16x32xf32, #tpu.memory_space<vmem>>, %arg5: memref<1x16x32xf32, #tpu.memory_space<vmem>>, %arg6: memref<1x64x96xbf16, #tpu.memory_space<vmem>>, %arg7: memref<1x96x64xbf16, #tpu.memory_space<vmem>>, %arg8: memref<1x272x32xbf16, #tpu.memory_space<vmem>>, %arg9: memref<1x26x96xf32, #tpu.memory_space<vmem>>, %arg10: memref<1x16x32xf32, #tpu.memory_space<vmem>>) attributes {dimension_semantics = [#tpu.dimension_semantics<parallel>], iteration_bounds = array<i64: 2>, scalar_prefetch = 0 : i64, scratch_operands = 0 : i64, tpu.core_type = #tpu.core_type<tc>, window_params = [{pipeline_mode = #tpu.pipeline_mode<synchronous>, transform_indices = @transform_0, window_bounds = array<i64: 2, 1, 8>}, {pipeline_mode = #tpu.pipeline_mode<synchronous>, transform_indices = @transform_1, window_bounds = array<i64: 2, 8, 8>}, {pipeline_mode = #tpu.pipeline_mode<synchronous>, transform_indices = @transform_2, window_bounds = array<i64: 16, 16>}, {transform_indices = @transform_3, window_bounds = array<i64: 1, 16, 32>}, {transform_indices = @transform_4, window_bounds = array<i64: 1, 16, 32>}, {transform_indices = @transform_5, window_bounds = array<i64: 1, 64, 96>}, {transform_indices = @transform_6, window_bounds = array<i64: 1, 96, 64>}, {transform_indices = @transform_7, window_bounds = array<i64: 1, 272, 32>}, {transform_indices = @transform_8, window_bounds = array<i64: 1, 26, 96>}, {transform_indices = @transform_9, window_bounds = array<i64: 1, 16, 32>}]} {
    %c0 = arith.constant 0 : index
    %c0_0 = arith.constant 0 : index
    %c0_1 = arith.constant 0 : index
    %0 = vector.load %arg1[%c0, %c0_0, %c0_1] : memref<2x1x8xf32, #tpu.memory_space<vmem>>, vector<2x1x8xf32>
    %cst = arith.constant 5.000000e-01 : f32
    %1 = vector.broadcast %cst : f32 to vector<2x1x8xf32>
    %2 = arith.cmpf ogt, %0, %1 : vector<2x1x8xf32>
    %cst_2 = arith.constant 0.000000e+00 : f32
    %cst_3 = arith.constant -1.000000e+09 : f32
    %3 = vector.broadcast %cst_2 : f32 to vector<2x1x8xf32>
    %4 = vector.broadcast %cst_3 : f32 to vector<2x1x8xf32>
    %5 = arith.select %2, %3, %4 : vector<2x1x8xi1>, vector<2x1x8xf32>
    %c0_4 = arith.constant 0 : index
    %c0_5 = arith.constant 0 : index
    %c0_6 = arith.constant 0 : index
    %6 = vector.load %arg2[%c0_4, %c0_5, %c0_6] : memref<2x8x8xf32, #tpu.memory_space<vmem>>, vector<2x8x8xf32>
    %cst_7 = arith.constant 5.000000e-01 : f32
    %7 = vector.broadcast %cst_7 : f32 to vector<2x8x8xf32>
    %8 = arith.cmpf ogt, %6, %7 : vector<2x8x8xf32>
    %cst_8 = arith.constant 0.000000e+00 : f32
    %cst_9 = arith.constant -1.000000e+09 : f32
    %9 = vector.broadcast %cst_8 : f32 to vector<2x8x8xf32>
    %10 = vector.broadcast %cst_9 : f32 to vector<2x8x8xf32>
    %11 = arith.select %8, %9, %10 : vector<2x8x8xi1>, vector<2x8x8xf32>
    %c0_10 = arith.constant 0 : index
    %c0_11 = arith.constant 0 : index
    %c0_12 = arith.constant 0 : index
    %12 = vector.load %arg4[%c0_10, %c0_11, %c0_12] : memref<1x16x32xf32, #tpu.memory_space<vmem>>, vector<1x16x32xf32>
    %13 = vector.shape_cast %12 : vector<1x16x32xf32> to vector<16x32xf32>
    %c0_13 = arith.constant 0 : index
    %c0_14 = arith.constant 0 : index
    %14 = vector.load %arg3[%c0_13, %c0_14] : memref<16x16xf32, #tpu.memory_space<vmem>>, vector<16x16xf32>
    %c0_15 = arith.constant 0 : index
    %c0_16 = arith.constant 0 : index
    %c0_17 = arith.constant 0 : index
    %15 = vector.load %arg8[%c0_15, %c0_16, %c0_17] : memref<1x272x32xbf16, #tpu.memory_space<vmem>>, vector<1x16x32xbf16>
    %16 = vector.shape_cast %15 : vector<1x16x32xbf16> to vector<16x32xbf16>
    %17 = arith.truncf %14 : vector<16x16xf32> to vector<16x16xbf16>
    %cst_18 = arith.constant dense<0.000000e+00> : vector<16x32xf32>
    %18 = tpu.matmul %17, %16, %cst_18 {dimension_numbers = #tpu.dot_dimension_numbers<[1], [0], [0], [1], [0, 0, 1, 1], [], []>} : vector<16x16xbf16>, vector<16x32xbf16>, vector<16x32xf32> -> vector<16x32xf32>
    %19 = arith.addf %13, %18 : vector<16x32xf32>
    %c0_19 = arith.constant 0 : index
    %c0_20 = arith.constant 0 : index
    %c0_21 = arith.constant 0 : index
    %20 = vector.load %arg9[%c0_19, %c0_20, %c0_21] : memref<1x26x96xf32, #tpu.memory_space<vmem>>, vector<1x1x32xf32>
    %21 = vector.shape_cast %20 : vector<1x1x32xf32> to vector<1x32xf32>
    %22 = vector.broadcast %21 : vector<1x32xf32> to vector<16x32xf32>
    %23 = arith.addf %19, %22 : vector<16x32xf32>
    %cst_22 = arith.constant dense<0.000000e+00> : vector<16xf32>
    %24 = vector.multi_reduction <add>, %23, %cst_22 [1] : vector<16x32xf32> to vector<16xf32>
    %25 = vector.shape_cast %24 : vector<16xf32> to vector<16x1xf32>
    %cst_23 = arith.constant 3.200000e+01 : f32
    %26 = vector.broadcast %cst_23 : f32 to vector<16x1xf32>
    %27 = arith.divf %25, %26 : vector<16x1xf32>
    %28 = vector.broadcast %27 : vector<16x1xf32> to vector<16x32xf32>
    %29 = arith.subf %23, %28 : vector<16x32xf32>
    %30 = arith.mulf %29, %29 : vector<16x32xf32>
    %cst_24 = arith.constant dense<0.000000e+00> : vector<16xf32>
    %31 = vector.multi_reduction <add>, %30, %cst_24 [1] : vector<16x32xf32> to vector<16xf32>
    %32 = vector.shape_cast %31 : vector<16xf32> to vector<16x1xf32>
    %cst_25 = arith.constant 3.200000e+01 : f32
    %33 = vector.broadcast %cst_25 : f32 to vector<16x1xf32>
    %34 = arith.divf %32, %33 : vector<16x1xf32>
    %35 = vector.broadcast %27 : vector<16x1xf32> to vector<16x32xf32>
    %36 = arith.subf %23, %35 : vector<16x32xf32>
    %cst_26 = arith.constant 9.99999997E-7 : f32
    %37 = vector.broadcast %cst_26 : f32 to vector<16x1xf32>
    %38 = arith.addf %34, %37 : vector<16x1xf32>
    %39 = math.rsqrt %38 : vector<16x1xf32>
    %40 = vector.broadcast %39 : vector<16x1xf32> to vector<16x32xf32>
    %41 = arith.mulf %36, %40 : vector<16x32xf32>
    %c0_27 = arith.constant 0 : index
    %c1 = arith.constant 1 : index
    %c0_28 = arith.constant 0 : index
    %42 = vector.load %arg9[%c0_27, %c1, %c0_28] : memref<1x26x96xf32, #tpu.memory_space<vmem>>, vector<1x1x32xf32>
    %43 = vector.shape_cast %42 : vector<1x1x32xf32> to vector<1x32xf32>
    %44 = vector.broadcast %43 : vector<1x32xf32> to vector<16x32xf32>
    %45 = arith.mulf %41, %44 : vector<16x32xf32>
    %c0_29 = arith.constant 0 : index
    %c2 = arith.constant 2 : index
    %c0_30 = arith.constant 0 : index
    %46 = vector.load %arg9[%c0_29, %c2, %c0_30] : memref<1x26x96xf32, #tpu.memory_space<vmem>>, vector<1x1x32xf32>
    %47 = vector.shape_cast %46 : vector<1x1x32xf32> to vector<1x32xf32>
    %48 = vector.broadcast %47 : vector<1x32xf32> to vector<16x32xf32>
    %49 = arith.addf %45, %48 : vector<16x32xf32>
    %c0_31 = arith.constant 0 : index
    %c0_32 = arith.constant 0 : index
    %c0_33 = arith.constant 0 : index
    %50 = vector.load %arg6[%c0_31, %c0_32, %c0_33] : memref<1x64x96xbf16, #tpu.memory_space<vmem>>, vector<1x32x96xbf16>
    %51 = vector.shape_cast %50 : vector<1x32x96xbf16> to vector<32x96xbf16>
    %c0_34 = arith.constant 0 : index
    %c16 = arith.constant 16 : index
    %c0_35 = arith.constant 0 : index
    %52 = vector.load %arg8[%c0_34, %c16, %c0_35] : memref<1x272x32xbf16, #tpu.memory_space<vmem>>, vector<1x32x32xbf16>
    %53 = vector.shape_cast %52 : vector<1x32x32xbf16> to vector<32x32xbf16>
    %54 = arith.truncf %49 : vector<16x32xf32> to vector<16x32xbf16>
    %cst_36 = arith.constant dense<0.000000e+00> : vector<16x96xf32>
    %55 = tpu.matmul %54, %51, %cst_36 {dimension_numbers = #tpu.dot_dimension_numbers<[1], [0], [0], [1], [0, 0, 1, 1], [], []>} : vector<16x32xbf16>, vector<32x96xbf16>, vector<16x96xf32> -> vector<16x96xf32>
    %c0_37 = arith.constant 0 : index
    %c3 = arith.constant 3 : index
    %c0_38 = arith.constant 0 : index
    %56 = vector.load %arg9[%c0_37, %c3, %c0_38] : memref<1x26x96xf32, #tpu.memory_space<vmem>>, vector<1x1x96xf32>
    %57 = vector.shape_cast %56 : vector<1x1x96xf32> to vector<1x96xf32>
    %58 = vector.broadcast %57 : vector<1x96xf32> to vector<16x96xf32>
    %59 = arith.addf %55, %58 : vector<16x96xf32>
    %60 = vector.extract_strided_slice %59 {offsets = [0, 0], sizes = [16, 32], strides = [1, 1]} : vector<16x96xf32> to vector<16x32xf32>
    %61 = vector.extract_strided_slice %59 {offsets = [0, 32], sizes = [16, 32], strides = [1, 1]} : vector<16x96xf32> to vector<16x32xf32>
    %62 = vector.extract_strided_slice %59 {offsets = [0, 64], sizes = [16, 32], strides = [1, 1]} : vector<16x96xf32> to vector<16x32xf32>
    %c0_39 = arith.constant 0 : index
    %c4 = arith.constant 4 : index
    %c0_40 = arith.constant 0 : index
    %63 = vector.load %arg9[%c0_39, %c4, %c0_40] : memref<1x26x96xf32, #tpu.memory_space<vmem>>, vector<1x1x32xf32>
    %64 = vector.shape_cast %63 : vector<1x1x32xf32> to vector<1x32xf32>
    %65 = vector.shape_cast %60 : vector<16x32xf32> to vector<2x8x32xf32>
    %66 = arith.truncf %65 : vector<2x8x32xf32> to vector<2x8x32xbf16>
    %67 = vector.shape_cast %61 : vector<16x32xf32> to vector<2x8x32xf32>
    %68 = arith.truncf %67 : vector<2x8x32xf32> to vector<2x8x32xbf16>
    %69 = vector.shape_cast %62 : vector<16x32xf32> to vector<2x8x32xf32>
    %70 = arith.truncf %69 : vector<2x8x32xf32> to vector<2x8x32xbf16>
    %71 = vector.extract_strided_slice %66 {offsets = [0, 0, 0], sizes = [2, 8, 16], strides = [1, 1, 1]} : vector<2x8x32xbf16> to vector<2x8x16xbf16>
    %72 = vector.extract_strided_slice %68 {offsets = [0, 0, 0], sizes = [2, 8, 16], strides = [1, 1, 1]} : vector<2x8x32xbf16> to vector<2x8x16xbf16>
    "tpu.trace_start"() <{level = 10 : i32, message = "bqd,bkd->bqk"}> : () -> ()
    %cst_41 = arith.constant dense<0.000000e+00> : vector<2x8x8xf32>
    %73 = tpu.matmul %71, %72, %cst_41 {dimension_numbers = #tpu.dot_dimension_numbers<[2], [2], [1], [1], [0, 0, 0, 1, 1, 1], [0], [0]>} : vector<2x8x16xbf16>, vector<2x8x16xbf16>, vector<2x8x8xf32> -> vector<2x8x8xf32>
    "tpu.trace_stop"() : () -> ()
    %74 = vector.broadcast %5 : vector<2x1x8xf32> to vector<2x8x8xf32>
    %75 = arith.addf %73, %74 : vector<2x8x8xf32>
    %cst_42 = arith.constant dense<0xFF800000> : vector<2x8xf32>
    %76 = vector.multi_reduction <maximumf>, %75, %cst_42 [2] : vector<2x8x8xf32> to vector<2x8xf32>
    %77 = vector.shape_cast %76 : vector<2x8xf32> to vector<2x8x1xf32>
    %78 = vector.broadcast %77 : vector<2x8x1xf32> to vector<2x8x8xf32>
    %79 = arith.subf %75, %78 : vector<2x8x8xf32>
    %80 = math.exp %79 : vector<2x8x8xf32>
    %cst_43 = arith.constant dense<0.000000e+00> : vector<2x8xf32>
    %81 = vector.multi_reduction <add>, %80, %cst_43 [2] : vector<2x8x8xf32> to vector<2x8xf32>
    %82 = vector.shape_cast %81 : vector<2x8xf32> to vector<2x8x1xf32>
    %83 = tpu.reciprocal %82 {approx = true} : vector<2x8x1xf32> -> vector<2x8x1xf32>
    %84 = vector.broadcast %83 : vector<2x8x1xf32> to vector<2x8x8xf32>
    %85 = arith.mulf %80, %84 : vector<2x8x8xf32>
    %86 = arith.truncf %85 : vector<2x8x8xf32> to vector<2x8x8xbf16>
    %87 = vector.extract_strided_slice %70 {offsets = [0, 0, 0], sizes = [2, 8, 16], strides = [1, 1, 1]} : vector<2x8x32xbf16> to vector<2x8x16xbf16>
    "tpu.trace_start"() <{level = 10 : i32, message = "bqk,bkd->bqd"}> : () -> ()
    %cst_44 = arith.constant dense<0.000000e+00> : vector<2x8x16xf32>
    %88 = tpu.matmul %86, %87, %cst_44 {dimension_numbers = #tpu.dot_dimension_numbers<[2], [1], [1], [2], [0, 0, 0, 1, 1, 2], [0], [0]>} : vector<2x8x8xbf16>, vector<2x8x16xbf16>, vector<2x8x16xf32> -> vector<2x8x16xf32>
    "tpu.trace_stop"() : () -> ()
    %89 = vector.extract_strided_slice %66 {offsets = [0, 0, 16], sizes = [2, 8, 16], strides = [1, 1, 1]} : vector<2x8x32xbf16> to vector<2x8x16xbf16>
    %90 = vector.extract_strided_slice %68 {offsets = [0, 0, 16], sizes = [2, 8, 16], strides = [1, 1, 1]} : vector<2x8x32xbf16> to vector<2x8x16xbf16>
    "tpu.trace_start"() <{level = 10 : i32, message = "bqd,bkd->bqk"}> : () -> ()
    %cst_45 = arith.constant dense<0.000000e+00> : vector<2x8x8xf32>
    %91 = tpu.matmul %89, %90, %cst_45 {dimension_numbers = #tpu.dot_dimension_numbers<[2], [2], [1], [1], [0, 0, 0, 1, 1, 1], [0], [0]>} : vector<2x8x16xbf16>, vector<2x8x16xbf16>, vector<2x8x8xf32> -> vector<2x8x8xf32>
    "tpu.trace_stop"() : () -> ()
    %92 = vector.broadcast %5 : vector<2x1x8xf32> to vector<2x8x8xf32>
    %93 = arith.addf %91, %92 : vector<2x8x8xf32>
    %cst_46 = arith.constant dense<0xFF800000> : vector<2x8xf32>
    %94 = vector.multi_reduction <maximumf>, %93, %cst_46 [2] : vector<2x8x8xf32> to vector<2x8xf32>
    %95 = vector.shape_cast %94 : vector<2x8xf32> to vector<2x8x1xf32>
    %96 = vector.broadcast %95 : vector<2x8x1xf32> to vector<2x8x8xf32>
    %97 = arith.subf %93, %96 : vector<2x8x8xf32>
    %98 = math.exp %97 : vector<2x8x8xf32>
    %cst_47 = arith.constant dense<0.000000e+00> : vector<2x8xf32>
    %99 = vector.multi_reduction <add>, %98, %cst_47 [2] : vector<2x8x8xf32> to vector<2x8xf32>
    %100 = vector.shape_cast %99 : vector<2x8xf32> to vector<2x8x1xf32>
    %101 = tpu.reciprocal %100 {approx = true} : vector<2x8x1xf32> -> vector<2x8x1xf32>
    %102 = vector.broadcast %101 : vector<2x8x1xf32> to vector<2x8x8xf32>
    %103 = arith.mulf %98, %102 : vector<2x8x8xf32>
    %104 = arith.truncf %103 : vector<2x8x8xf32> to vector<2x8x8xbf16>
    %105 = vector.extract_strided_slice %70 {offsets = [0, 0, 16], sizes = [2, 8, 16], strides = [1, 1, 1]} : vector<2x8x32xbf16> to vector<2x8x16xbf16>
    "tpu.trace_start"() <{level = 10 : i32, message = "bqk,bkd->bqd"}> : () -> ()
    %cst_48 = arith.constant dense<0.000000e+00> : vector<2x8x16xf32>
    %106 = tpu.matmul %104, %105, %cst_48 {dimension_numbers = #tpu.dot_dimension_numbers<[2], [1], [1], [2], [0, 0, 0, 1, 1, 2], [0], [0]>} : vector<2x8x8xbf16>, vector<2x8x16xbf16>, vector<2x8x16xf32> -> vector<2x8x16xf32>
    "tpu.trace_stop"() : () -> ()
    %107 = tpu.concatenate %88, %106 in 2 : vector<2x8x16xf32>, vector<2x8x16xf32> -> vector<2x8x32xf32>
    %108 = vector.shape_cast %107 : vector<2x8x32xf32> to vector<16x32xf32>
    %109 = arith.truncf %108 : vector<16x32xf32> to vector<16x32xbf16>
    %cst_49 = arith.constant dense<0.000000e+00> : vector<16x32xf32>
    %110 = tpu.matmul %109, %53, %cst_49 {dimension_numbers = #tpu.dot_dimension_numbers<[1], [0], [0], [1], [0, 0, 1, 1], [], []>} : vector<16x32xbf16>, vector<32x32xbf16>, vector<16x32xf32> -> vector<16x32xf32>
    %111 = vector.broadcast %64 : vector<1x32xf32> to vector<16x32xf32>
    %112 = arith.addf %110, %111 : vector<16x32xf32>
    %113 = arith.addf %23, %112 : vector<16x32xf32>
    %cst_50 = arith.constant dense<0.000000e+00> : vector<16xf32>
    %114 = vector.multi_reduction <add>, %113, %cst_50 [1] : vector<16x32xf32> to vector<16xf32>
    %115 = vector.shape_cast %114 : vector<16xf32> to vector<16x1xf32>
    %cst_51 = arith.constant 3.200000e+01 : f32
    %116 = vector.broadcast %cst_51 : f32 to vector<16x1xf32>
    %117 = arith.divf %115, %116 : vector<16x1xf32>
    %118 = vector.broadcast %117 : vector<16x1xf32> to vector<16x32xf32>
    %119 = arith.subf %113, %118 : vector<16x32xf32>
    %120 = arith.mulf %119, %119 : vector<16x32xf32>
    %cst_52 = arith.constant dense<0.000000e+00> : vector<16xf32>
    %121 = vector.multi_reduction <add>, %120, %cst_52 [1] : vector<16x32xf32> to vector<16xf32>
    %122 = vector.shape_cast %121 : vector<16xf32> to vector<16x1xf32>
    %cst_53 = arith.constant 3.200000e+01 : f32
    %123 = vector.broadcast %cst_53 : f32 to vector<16x1xf32>
    %124 = arith.divf %122, %123 : vector<16x1xf32>
    %125 = vector.broadcast %117 : vector<16x1xf32> to vector<16x32xf32>
    %126 = arith.subf %113, %125 : vector<16x32xf32>
    %cst_54 = arith.constant 9.99999997E-7 : f32
    %127 = vector.broadcast %cst_54 : f32 to vector<16x1xf32>
    %128 = arith.addf %124, %127 : vector<16x1xf32>
    %129 = math.rsqrt %128 : vector<16x1xf32>
    %130 = vector.broadcast %129 : vector<16x1xf32> to vector<16x32xf32>
    %131 = arith.mulf %126, %130 : vector<16x32xf32>
    %c0_55 = arith.constant 0 : index
    %c5 = arith.constant 5 : index
    %c0_56 = arith.constant 0 : index
    %132 = vector.load %arg9[%c0_55, %c5, %c0_56] : memref<1x26x96xf32, #tpu.memory_space<vmem>>, vector<1x1x32xf32>
    %133 = vector.shape_cast %132 : vector<1x1x32xf32> to vector<1x32xf32>
    %134 = vector.broadcast %133 : vector<1x32xf32> to vector<16x32xf32>
    %135 = arith.mulf %131, %134 : vector<16x32xf32>
    %c0_57 = arith.constant 0 : index
    %c6 = arith.constant 6 : index
    %c0_58 = arith.constant 0 : index
    %136 = vector.load %arg9[%c0_57, %c6, %c0_58] : memref<1x26x96xf32, #tpu.memory_space<vmem>>, vector<1x1x32xf32>
    %137 = vector.shape_cast %136 : vector<1x1x32xf32> to vector<1x32xf32>
    %138 = vector.broadcast %137 : vector<1x32xf32> to vector<16x32xf32>
    %139 = arith.addf %135, %138 : vector<16x32xf32>
    %c0_59 = arith.constant 0 : index
    %c0_60 = arith.constant 0 : index
    %c0_61 = arith.constant 0 : index
    %140 = vector.load %arg7[%c0_59, %c0_60, %c0_61] : memref<1x96x64xbf16, #tpu.memory_space<vmem>>, vector<1x32x64xbf16>
    %141 = vector.shape_cast %140 : vector<1x32x64xbf16> to vector<32x64xbf16>
    %c0_62 = arith.constant 0 : index
    %c48 = arith.constant 48 : index
    %c0_63 = arith.constant 0 : index
    %142 = vector.load %arg8[%c0_62, %c48, %c0_63] : memref<1x272x32xbf16, #tpu.memory_space<vmem>>, vector<1x64x32xbf16>
    %143 = vector.shape_cast %142 : vector<1x64x32xbf16> to vector<64x32xbf16>
    %144 = arith.truncf %139 : vector<16x32xf32> to vector<16x32xbf16>
    %cst_64 = arith.constant dense<0.000000e+00> : vector<16x64xf32>
    %145 = tpu.matmul %144, %141, %cst_64 {dimension_numbers = #tpu.dot_dimension_numbers<[1], [0], [0], [1], [0, 0, 1, 1], [], []>} : vector<16x32xbf16>, vector<32x64xbf16>, vector<16x64xf32> -> vector<16x64xf32>
    %c0_65 = arith.constant 0 : index
    %c7 = arith.constant 7 : index
    %c0_66 = arith.constant 0 : index
    %146 = vector.load %arg9[%c0_65, %c7, %c0_66] : memref<1x26x96xf32, #tpu.memory_space<vmem>>, vector<1x1x64xf32>
    %147 = vector.shape_cast %146 : vector<1x1x64xf32> to vector<1x64xf32>
    %148 = vector.broadcast %147 : vector<1x64xf32> to vector<16x64xf32>
    %149 = arith.addf %145, %148 : vector<16x64xf32>
    %cst_67 = arith.constant 0.000000e+00 : f32
    %150 = vector.broadcast %cst_67 : f32 to vector<16x64xf32>
    %151 = arith.maximumf %149, %150 : vector<16x64xf32>
    %152 = arith.truncf %151 : vector<16x64xf32> to vector<16x64xbf16>
    %cst_68 = arith.constant dense<0.000000e+00> : vector<16x32xf32>
    %153 = tpu.matmul %152, %143, %cst_68 {dimension_numbers = #tpu.dot_dimension_numbers<[1], [0], [0], [1], [0, 0, 1, 1], [], []>} : vector<16x64xbf16>, vector<64x32xbf16>, vector<16x32xf32> -> vector<16x32xf32>
    %c0_69 = arith.constant 0 : index
    %c8 = arith.constant 8 : index
    %c0_70 = arith.constant 0 : index
    %154 = vector.load %arg9[%c0_69, %c8, %c0_70] : memref<1x26x96xf32, #tpu.memory_space<vmem>>, vector<1x1x32xf32>
    %155 = vector.shape_cast %154 : vector<1x1x32xf32> to vector<1x32xf32>
    %156 = vector.broadcast %155 : vector<1x32xf32> to vector<16x32xf32>
    %157 = arith.addf %153, %156 : vector<16x32xf32>
    %158 = arith.addf %113, %157 : vector<16x32xf32>
    %cst_71 = arith.constant dense<0.000000e+00> : vector<16xf32>
    %159 = vector.multi_reduction <add>, %158, %cst_71 [1] : vector<16x32xf32> to vector<16xf32>
    %160 = vector.shape_cast %159 : vector<16xf32> to vector<16x1xf32>
    %cst_72 = arith.constant 3.200000e+01 : f32
    %161 = vector.broadcast %cst_72 : f32 to vector<16x1xf32>
    %162 = arith.divf %160, %161 : vector<16x1xf32>
    %163 = vector.broadcast %162 : vector<16x1xf32> to vector<16x32xf32>
    %164 = arith.subf %158, %163 : vector<16x32xf32>
    %165 = arith.mulf %164, %164 : vector<16x32xf32>
    %cst_73 = arith.constant dense<0.000000e+00> : vector<16xf32>
    %166 = vector.multi_reduction <add>, %165, %cst_73 [1] : vector<16x32xf32> to vector<16xf32>
    %167 = vector.shape_cast %166 : vector<16xf32> to vector<16x1xf32>
    %cst_74 = arith.constant 3.200000e+01 : f32
    %168 = vector.broadcast %cst_74 : f32 to vector<16x1xf32>
    %169 = arith.divf %167, %168 : vector<16x1xf32>
    %170 = vector.broadcast %162 : vector<16x1xf32> to vector<16x32xf32>
    %171 = arith.subf %158, %170 : vector<16x32xf32>
    %cst_75 = arith.constant 9.99999997E-7 : f32
    %172 = vector.broadcast %cst_75 : f32 to vector<16x1xf32>
    %173 = arith.addf %169, %172 : vector<16x1xf32>
    %174 = math.rsqrt %173 : vector<16x1xf32>
    %175 = vector.broadcast %174 : vector<16x1xf32> to vector<16x32xf32>
    %176 = arith.mulf %171, %175 : vector<16x32xf32>
    %c0_76 = arith.constant 0 : index
    %c9 = arith.constant 9 : index
    %c0_77 = arith.constant 0 : index
    %177 = vector.load %arg9[%c0_76, %c9, %c0_77] : memref<1x26x96xf32, #tpu.memory_space<vmem>>, vector<1x1x32xf32>
    %178 = vector.shape_cast %177 : vector<1x1x32xf32> to vector<1x32xf32>
    %179 = vector.broadcast %178 : vector<1x32xf32> to vector<16x32xf32>
    %180 = arith.mulf %176, %179 : vector<16x32xf32>
    %c0_78 = arith.constant 0 : index
    %c10 = arith.constant 10 : index
    %c0_79 = arith.constant 0 : index
    %181 = vector.load %arg9[%c0_78, %c10, %c0_79] : memref<1x26x96xf32, #tpu.memory_space<vmem>>, vector<1x1x32xf32>
    %182 = vector.shape_cast %181 : vector<1x1x32xf32> to vector<1x32xf32>
    %183 = vector.broadcast %182 : vector<1x32xf32> to vector<16x32xf32>
    %184 = arith.addf %180, %183 : vector<16x32xf32>
    %c0_80 = arith.constant 0 : index
    %c0_81 = arith.constant 0 : index
    %c0_82 = arith.constant 0 : index
    %185 = vector.load %arg5[%c0_80, %c0_81, %c0_82] : memref<1x16x32xf32, #tpu.memory_space<vmem>>, vector<1x16x32xf32>
    %186 = vector.shape_cast %185 : vector<1x16x32xf32> to vector<16x32xf32>
    %cst_83 = arith.constant dense<0.000000e+00> : vector<16xf32>
    %187 = vector.multi_reduction <add>, %186, %cst_83 [1] : vector<16x32xf32> to vector<16xf32>
    %188 = vector.shape_cast %187 : vector<16xf32> to vector<16x1xf32>
    %cst_84 = arith.constant 3.200000e+01 : f32
    %189 = vector.broadcast %cst_84 : f32 to vector<16x1xf32>
    %190 = arith.divf %188, %189 : vector<16x1xf32>
    %191 = vector.broadcast %190 : vector<16x1xf32> to vector<16x32xf32>
    %192 = arith.subf %186, %191 : vector<16x32xf32>
    %193 = arith.mulf %192, %192 : vector<16x32xf32>
    %cst_85 = arith.constant dense<0.000000e+00> : vector<16xf32>
    %194 = vector.multi_reduction <add>, %193, %cst_85 [1] : vector<16x32xf32> to vector<16xf32>
    %195 = vector.shape_cast %194 : vector<16xf32> to vector<16x1xf32>
    %cst_86 = arith.constant 3.200000e+01 : f32
    %196 = vector.broadcast %cst_86 : f32 to vector<16x1xf32>
    %197 = arith.divf %195, %196 : vector<16x1xf32>
    %198 = vector.broadcast %190 : vector<16x1xf32> to vector<16x32xf32>
    %199 = arith.subf %186, %198 : vector<16x32xf32>
    %cst_87 = arith.constant 9.99999997E-7 : f32
    %200 = vector.broadcast %cst_87 : f32 to vector<16x1xf32>
    %201 = arith.addf %197, %200 : vector<16x1xf32>
    %202 = math.rsqrt %201 : vector<16x1xf32>
    %203 = vector.broadcast %202 : vector<16x1xf32> to vector<16x32xf32>
    %204 = arith.mulf %199, %203 : vector<16x32xf32>
    %c0_88 = arith.constant 0 : index
    %c11 = arith.constant 11 : index
    %c0_89 = arith.constant 0 : index
    %205 = vector.load %arg9[%c0_88, %c11, %c0_89] : memref<1x26x96xf32, #tpu.memory_space<vmem>>, vector<1x1x32xf32>
    %206 = vector.shape_cast %205 : vector<1x1x32xf32> to vector<1x32xf32>
    %207 = vector.broadcast %206 : vector<1x32xf32> to vector<16x32xf32>
    %208 = arith.mulf %204, %207 : vector<16x32xf32>
    %c0_90 = arith.constant 0 : index
    %c12 = arith.constant 12 : index
    %c0_91 = arith.constant 0 : index
    %209 = vector.load %arg9[%c0_90, %c12, %c0_91] : memref<1x26x96xf32, #tpu.memory_space<vmem>>, vector<1x1x32xf32>
    %210 = vector.shape_cast %209 : vector<1x1x32xf32> to vector<1x32xf32>
    %211 = vector.broadcast %210 : vector<1x32xf32> to vector<16x32xf32>
    %212 = arith.addf %208, %211 : vector<16x32xf32>
    %c0_92 = arith.constant 0 : index
    %c32 = arith.constant 32 : index
    %c0_93 = arith.constant 0 : index
    %213 = vector.load %arg6[%c0_92, %c32, %c0_93] : memref<1x64x96xbf16, #tpu.memory_space<vmem>>, vector<1x32x96xbf16>
    %214 = vector.shape_cast %213 : vector<1x32x96xbf16> to vector<32x96xbf16>
    %c0_94 = arith.constant 0 : index
    %c112 = arith.constant 112 : index
    %c0_95 = arith.constant 0 : index
    %215 = vector.load %arg8[%c0_94, %c112, %c0_95] : memref<1x272x32xbf16, #tpu.memory_space<vmem>>, vector<1x32x32xbf16>
    %216 = vector.shape_cast %215 : vector<1x32x32xbf16> to vector<32x32xbf16>
    %217 = arith.truncf %212 : vector<16x32xf32> to vector<16x32xbf16>
    %cst_96 = arith.constant dense<0.000000e+00> : vector<16x96xf32>
    %218 = tpu.matmul %217, %214, %cst_96 {dimension_numbers = #tpu.dot_dimension_numbers<[1], [0], [0], [1], [0, 0, 1, 1], [], []>} : vector<16x32xbf16>, vector<32x96xbf16>, vector<16x96xf32> -> vector<16x96xf32>
    %c0_97 = arith.constant 0 : index
    %c13 = arith.constant 13 : index
    %c0_98 = arith.constant 0 : index
    %219 = vector.load %arg9[%c0_97, %c13, %c0_98] : memref<1x26x96xf32, #tpu.memory_space<vmem>>, vector<1x1x96xf32>
    %220 = vector.shape_cast %219 : vector<1x1x96xf32> to vector<1x96xf32>
    %221 = vector.broadcast %220 : vector<1x96xf32> to vector<16x96xf32>
    %222 = arith.addf %218, %221 : vector<16x96xf32>
    %223 = vector.extract_strided_slice %222 {offsets = [0, 0], sizes = [16, 32], strides = [1, 1]} : vector<16x96xf32> to vector<16x32xf32>
    %224 = vector.extract_strided_slice %222 {offsets = [0, 32], sizes = [16, 32], strides = [1, 1]} : vector<16x96xf32> to vector<16x32xf32>
    %225 = vector.extract_strided_slice %222 {offsets = [0, 64], sizes = [16, 32], strides = [1, 1]} : vector<16x96xf32> to vector<16x32xf32>
    %c0_99 = arith.constant 0 : index
    %c14 = arith.constant 14 : index
    %c0_100 = arith.constant 0 : index
    %226 = vector.load %arg9[%c0_99, %c14, %c0_100] : memref<1x26x96xf32, #tpu.memory_space<vmem>>, vector<1x1x32xf32>
    %227 = vector.shape_cast %226 : vector<1x1x32xf32> to vector<1x32xf32>
    %228 = vector.shape_cast %223 : vector<16x32xf32> to vector<2x8x32xf32>
    %229 = arith.truncf %228 : vector<2x8x32xf32> to vector<2x8x32xbf16>
    %230 = vector.shape_cast %224 : vector<16x32xf32> to vector<2x8x32xf32>
    %231 = arith.truncf %230 : vector<2x8x32xf32> to vector<2x8x32xbf16>
    %232 = vector.shape_cast %225 : vector<16x32xf32> to vector<2x8x32xf32>
    %233 = arith.truncf %232 : vector<2x8x32xf32> to vector<2x8x32xbf16>
    %234 = vector.extract_strided_slice %229 {offsets = [0, 0, 0], sizes = [2, 8, 16], strides = [1, 1, 1]} : vector<2x8x32xbf16> to vector<2x8x16xbf16>
    %235 = vector.extract_strided_slice %231 {offsets = [0, 0, 0], sizes = [2, 8, 16], strides = [1, 1, 1]} : vector<2x8x32xbf16> to vector<2x8x16xbf16>
    "tpu.trace_start"() <{level = 10 : i32, message = "bqd,bkd->bqk"}> : () -> ()
    %cst_101 = arith.constant dense<0.000000e+00> : vector<2x8x8xf32>
    %236 = tpu.matmul %234, %235, %cst_101 {dimension_numbers = #tpu.dot_dimension_numbers<[2], [2], [1], [1], [0, 0, 0, 1, 1, 1], [0], [0]>} : vector<2x8x16xbf16>, vector<2x8x16xbf16>, vector<2x8x8xf32> -> vector<2x8x8xf32>
    "tpu.trace_stop"() : () -> ()
    %237 = arith.addf %236, %11 : vector<2x8x8xf32>
    %cst_102 = arith.constant dense<0xFF800000> : vector<2x8xf32>
    %238 = vector.multi_reduction <maximumf>, %237, %cst_102 [2] : vector<2x8x8xf32> to vector<2x8xf32>
    %239 = vector.shape_cast %238 : vector<2x8xf32> to vector<2x8x1xf32>
    %240 = vector.broadcast %239 : vector<2x8x1xf32> to vector<2x8x8xf32>
    %241 = arith.subf %237, %240 : vector<2x8x8xf32>
    %242 = math.exp %241 : vector<2x8x8xf32>
    %cst_103 = arith.constant dense<0.000000e+00> : vector<2x8xf32>
    %243 = vector.multi_reduction <add>, %242, %cst_103 [2] : vector<2x8x8xf32> to vector<2x8xf32>
    %244 = vector.shape_cast %243 : vector<2x8xf32> to vector<2x8x1xf32>
    %245 = tpu.reciprocal %244 {approx = true} : vector<2x8x1xf32> -> vector<2x8x1xf32>
    %246 = vector.broadcast %245 : vector<2x8x1xf32> to vector<2x8x8xf32>
    %247 = arith.mulf %242, %246 : vector<2x8x8xf32>
    %248 = arith.truncf %247 : vector<2x8x8xf32> to vector<2x8x8xbf16>
    %249 = vector.extract_strided_slice %233 {offsets = [0, 0, 0], sizes = [2, 8, 16], strides = [1, 1, 1]} : vector<2x8x32xbf16> to vector<2x8x16xbf16>
    "tpu.trace_start"() <{level = 10 : i32, message = "bqk,bkd->bqd"}> : () -> ()
    %cst_104 = arith.constant dense<0.000000e+00> : vector<2x8x16xf32>
    %250 = tpu.matmul %248, %249, %cst_104 {dimension_numbers = #tpu.dot_dimension_numbers<[2], [1], [1], [2], [0, 0, 0, 1, 1, 2], [0], [0]>} : vector<2x8x8xbf16>, vector<2x8x16xbf16>, vector<2x8x16xf32> -> vector<2x8x16xf32>
    "tpu.trace_stop"() : () -> ()
    %251 = vector.extract_strided_slice %229 {offsets = [0, 0, 16], sizes = [2, 8, 16], strides = [1, 1, 1]} : vector<2x8x32xbf16> to vector<2x8x16xbf16>
    %252 = vector.extract_strided_slice %231 {offsets = [0, 0, 16], sizes = [2, 8, 16], strides = [1, 1, 1]} : vector<2x8x32xbf16> to vector<2x8x16xbf16>
    "tpu.trace_start"() <{level = 10 : i32, message = "bqd,bkd->bqk"}> : () -> ()
    %cst_105 = arith.constant dense<0.000000e+00> : vector<2x8x8xf32>
    %253 = tpu.matmul %251, %252, %cst_105 {dimension_numbers = #tpu.dot_dimension_numbers<[2], [2], [1], [1], [0, 0, 0, 1, 1, 1], [0], [0]>} : vector<2x8x16xbf16>, vector<2x8x16xbf16>, vector<2x8x8xf32> -> vector<2x8x8xf32>
    "tpu.trace_stop"() : () -> ()
    %254 = arith.addf %253, %11 : vector<2x8x8xf32>
    %cst_106 = arith.constant dense<0xFF800000> : vector<2x8xf32>
    %255 = vector.multi_reduction <maximumf>, %254, %cst_106 [2] : vector<2x8x8xf32> to vector<2x8xf32>
    %256 = vector.shape_cast %255 : vector<2x8xf32> to vector<2x8x1xf32>
    %257 = vector.broadcast %256 : vector<2x8x1xf32> to vector<2x8x8xf32>
    %258 = arith.subf %254, %257 : vector<2x8x8xf32>
    %259 = math.exp %258 : vector<2x8x8xf32>
    %cst_107 = arith.constant dense<0.000000e+00> : vector<2x8xf32>
    %260 = vector.multi_reduction <add>, %259, %cst_107 [2] : vector<2x8x8xf32> to vector<2x8xf32>
    %261 = vector.shape_cast %260 : vector<2x8xf32> to vector<2x8x1xf32>
    %262 = tpu.reciprocal %261 {approx = true} : vector<2x8x1xf32> -> vector<2x8x1xf32>
    %263 = vector.broadcast %262 : vector<2x8x1xf32> to vector<2x8x8xf32>
    %264 = arith.mulf %259, %263 : vector<2x8x8xf32>
    %265 = arith.truncf %264 : vector<2x8x8xf32> to vector<2x8x8xbf16>
    %266 = vector.extract_strided_slice %233 {offsets = [0, 0, 16], sizes = [2, 8, 16], strides = [1, 1, 1]} : vector<2x8x32xbf16> to vector<2x8x16xbf16>
    "tpu.trace_start"() <{level = 10 : i32, message = "bqk,bkd->bqd"}> : () -> ()
    %cst_108 = arith.constant dense<0.000000e+00> : vector<2x8x16xf32>
    %267 = tpu.matmul %265, %266, %cst_108 {dimension_numbers = #tpu.dot_dimension_numbers<[2], [1], [1], [2], [0, 0, 0, 1, 1, 2], [0], [0]>} : vector<2x8x8xbf16>, vector<2x8x16xbf16>, vector<2x8x16xf32> -> vector<2x8x16xf32>
    "tpu.trace_stop"() : () -> ()
    %268 = tpu.concatenate %250, %267 in 2 : vector<2x8x16xf32>, vector<2x8x16xf32> -> vector<2x8x32xf32>
    %269 = vector.shape_cast %268 : vector<2x8x32xf32> to vector<16x32xf32>
    %270 = arith.truncf %269 : vector<16x32xf32> to vector<16x32xbf16>
    %cst_109 = arith.constant dense<0.000000e+00> : vector<16x32xf32>
    %271 = tpu.matmul %270, %216, %cst_109 {dimension_numbers = #tpu.dot_dimension_numbers<[1], [0], [0], [1], [0, 0, 1, 1], [], []>} : vector<16x32xbf16>, vector<32x32xbf16>, vector<16x32xf32> -> vector<16x32xf32>
    %272 = vector.broadcast %227 : vector<1x32xf32> to vector<16x32xf32>
    %273 = arith.addf %271, %272 : vector<16x32xf32>
    %274 = arith.addf %186, %273 : vector<16x32xf32>
    %cst_110 = arith.constant dense<0.000000e+00> : vector<16xf32>
    %275 = vector.multi_reduction <add>, %274, %cst_110 [1] : vector<16x32xf32> to vector<16xf32>
    %276 = vector.shape_cast %275 : vector<16xf32> to vector<16x1xf32>
    %cst_111 = arith.constant 3.200000e+01 : f32
    %277 = vector.broadcast %cst_111 : f32 to vector<16x1xf32>
    %278 = arith.divf %276, %277 : vector<16x1xf32>
    %279 = vector.broadcast %278 : vector<16x1xf32> to vector<16x32xf32>
    %280 = arith.subf %274, %279 : vector<16x32xf32>
    %281 = arith.mulf %280, %280 : vector<16x32xf32>
    %cst_112 = arith.constant dense<0.000000e+00> : vector<16xf32>
    %282 = vector.multi_reduction <add>, %281, %cst_112 [1] : vector<16x32xf32> to vector<16xf32>
    %283 = vector.shape_cast %282 : vector<16xf32> to vector<16x1xf32>
    %cst_113 = arith.constant 3.200000e+01 : f32
    %284 = vector.broadcast %cst_113 : f32 to vector<16x1xf32>
    %285 = arith.divf %283, %284 : vector<16x1xf32>
    %286 = vector.broadcast %278 : vector<16x1xf32> to vector<16x32xf32>
    %287 = arith.subf %274, %286 : vector<16x32xf32>
    %cst_114 = arith.constant 9.99999997E-7 : f32
    %288 = vector.broadcast %cst_114 : f32 to vector<16x1xf32>
    %289 = arith.addf %285, %288 : vector<16x1xf32>
    %290 = math.rsqrt %289 : vector<16x1xf32>
    %291 = vector.broadcast %290 : vector<16x1xf32> to vector<16x32xf32>
    %292 = arith.mulf %287, %291 : vector<16x32xf32>
    %c0_115 = arith.constant 0 : index
    %c15 = arith.constant 15 : index
    %c0_116 = arith.constant 0 : index
    %293 = vector.load %arg9[%c0_115, %c15, %c0_116] : memref<1x26x96xf32, #tpu.memory_space<vmem>>, vector<1x1x32xf32>
    %294 = vector.shape_cast %293 : vector<1x1x32xf32> to vector<1x32xf32>
    %295 = vector.broadcast %294 : vector<1x32xf32> to vector<16x32xf32>
    %296 = arith.mulf %292, %295 : vector<16x32xf32>
    %c0_117 = arith.constant 0 : index
    %c16_118 = arith.constant 16 : index
    %c0_119 = arith.constant 0 : index
    %297 = vector.load %arg9[%c0_117, %c16_118, %c0_119] : memref<1x26x96xf32, #tpu.memory_space<vmem>>, vector<1x1x32xf32>
    %298 = vector.shape_cast %297 : vector<1x1x32xf32> to vector<1x32xf32>
    %299 = vector.broadcast %298 : vector<1x32xf32> to vector<16x32xf32>
    %300 = arith.addf %296, %299 : vector<16x32xf32>
    %c0_120 = arith.constant 0 : index
    %c144 = arith.constant 144 : index
    %c0_121 = arith.constant 0 : index
    %301 = vector.load %arg8[%c0_120, %c144, %c0_121] : memref<1x272x32xbf16, #tpu.memory_space<vmem>>, vector<1x32x32xbf16>
    %302 = vector.shape_cast %301 : vector<1x32x32xbf16> to vector<32x32xbf16>
    %303 = arith.truncf %300 : vector<16x32xf32> to vector<16x32xbf16>
    %cst_122 = arith.constant dense<0.000000e+00> : vector<16x32xf32>
    %304 = tpu.matmul %303, %302, %cst_122 {dimension_numbers = #tpu.dot_dimension_numbers<[1], [0], [0], [1], [0, 0, 1, 1], [], []>} : vector<16x32xbf16>, vector<32x32xbf16>, vector<16x32xf32> -> vector<16x32xf32>
    %c0_123 = arith.constant 0 : index
    %c17 = arith.constant 17 : index
    %c0_124 = arith.constant 0 : index
    %305 = vector.load %arg9[%c0_123, %c17, %c0_124] : memref<1x26x96xf32, #tpu.memory_space<vmem>>, vector<1x1x32xf32>
    %306 = vector.shape_cast %305 : vector<1x1x32xf32> to vector<1x32xf32>
    %307 = vector.broadcast %306 : vector<1x32xf32> to vector<16x32xf32>
    %308 = arith.addf %304, %307 : vector<16x32xf32>
    %c0_125 = arith.constant 0 : index
    %c32_126 = arith.constant 32 : index
    %c0_127 = arith.constant 0 : index
    %309 = vector.load %arg7[%c0_125, %c32_126, %c0_127] : memref<1x96x64xbf16, #tpu.memory_space<vmem>>, vector<1x32x64xbf16>
    %310 = vector.shape_cast %309 : vector<1x32x64xbf16> to vector<32x64xbf16>
    %311 = arith.truncf %184 : vector<16x32xf32> to vector<16x32xbf16>
    %cst_128 = arith.constant dense<0.000000e+00> : vector<16x64xf32>
    %312 = tpu.matmul %311, %310, %cst_128 {dimension_numbers = #tpu.dot_dimension_numbers<[1], [0], [0], [1], [0, 0, 1, 1], [], []>} : vector<16x32xbf16>, vector<32x64xbf16>, vector<16x64xf32> -> vector<16x64xf32>
    %c0_129 = arith.constant 0 : index
    %c18 = arith.constant 18 : index
    %c0_130 = arith.constant 0 : index
    %313 = vector.load %arg9[%c0_129, %c18, %c0_130] : memref<1x26x96xf32, #tpu.memory_space<vmem>>, vector<1x1x64xf32>
    %314 = vector.shape_cast %313 : vector<1x1x64xf32> to vector<1x64xf32>
    %315 = vector.broadcast %314 : vector<1x64xf32> to vector<16x64xf32>
    %316 = arith.addf %312, %315 : vector<16x64xf32>
    %317 = vector.extract_strided_slice %316 {offsets = [0, 0], sizes = [16, 32], strides = [1, 1]} : vector<16x64xf32> to vector<16x32xf32>
    %318 = vector.extract_strided_slice %316 {offsets = [0, 32], sizes = [16, 32], strides = [1, 1]} : vector<16x64xf32> to vector<16x32xf32>
    %c0_131 = arith.constant 0 : index
    %c176 = arith.constant 176 : index
    %c0_132 = arith.constant 0 : index
    %319 = vector.load %arg8[%c0_131, %c176, %c0_132] : memref<1x272x32xbf16, #tpu.memory_space<vmem>>, vector<1x32x32xbf16>
    %320 = vector.shape_cast %319 : vector<1x32x32xbf16> to vector<32x32xbf16>
    %c0_133 = arith.constant 0 : index
    %c19 = arith.constant 19 : index
    %c0_134 = arith.constant 0 : index
    %321 = vector.load %arg9[%c0_133, %c19, %c0_134] : memref<1x26x96xf32, #tpu.memory_space<vmem>>, vector<1x1x32xf32>
    %322 = vector.shape_cast %321 : vector<1x1x32xf32> to vector<1x32xf32>
    %323 = vector.shape_cast %308 : vector<16x32xf32> to vector<2x8x32xf32>
    %324 = arith.truncf %323 : vector<2x8x32xf32> to vector<2x8x32xbf16>
    %325 = vector.shape_cast %317 : vector<16x32xf32> to vector<2x8x32xf32>
    %326 = arith.truncf %325 : vector<2x8x32xf32> to vector<2x8x32xbf16>
    %327 = vector.shape_cast %318 : vector<16x32xf32> to vector<2x8x32xf32>
    %328 = arith.truncf %327 : vector<2x8x32xf32> to vector<2x8x32xbf16>
    %329 = vector.extract_strided_slice %324 {offsets = [0, 0, 0], sizes = [2, 8, 16], strides = [1, 1, 1]} : vector<2x8x32xbf16> to vector<2x8x16xbf16>
    %330 = vector.extract_strided_slice %326 {offsets = [0, 0, 0], sizes = [2, 8, 16], strides = [1, 1, 1]} : vector<2x8x32xbf16> to vector<2x8x16xbf16>
    "tpu.trace_start"() <{level = 10 : i32, message = "bqd,bkd->bqk"}> : () -> ()
    %cst_135 = arith.constant dense<0.000000e+00> : vector<2x8x8xf32>
    %331 = tpu.matmul %329, %330, %cst_135 {dimension_numbers = #tpu.dot_dimension_numbers<[2], [2], [1], [1], [0, 0, 0, 1, 1, 1], [0], [0]>} : vector<2x8x16xbf16>, vector<2x8x16xbf16>, vector<2x8x8xf32> -> vector<2x8x8xf32>
    "tpu.trace_stop"() : () -> ()
    %332 = vector.broadcast %5 : vector<2x1x8xf32> to vector<2x8x8xf32>
    %333 = arith.addf %331, %332 : vector<2x8x8xf32>
    %cst_136 = arith.constant dense<0xFF800000> : vector<2x8xf32>
    %334 = vector.multi_reduction <maximumf>, %333, %cst_136 [2] : vector<2x8x8xf32> to vector<2x8xf32>
    %335 = vector.shape_cast %334 : vector<2x8xf32> to vector<2x8x1xf32>
    %336 = vector.broadcast %335 : vector<2x8x1xf32> to vector<2x8x8xf32>
    %337 = arith.subf %333, %336 : vector<2x8x8xf32>
    %338 = math.exp %337 : vector<2x8x8xf32>
    %cst_137 = arith.constant dense<0.000000e+00> : vector<2x8xf32>
    %339 = vector.multi_reduction <add>, %338, %cst_137 [2] : vector<2x8x8xf32> to vector<2x8xf32>
    %340 = vector.shape_cast %339 : vector<2x8xf32> to vector<2x8x1xf32>
    %341 = tpu.reciprocal %340 {approx = true} : vector<2x8x1xf32> -> vector<2x8x1xf32>
    %342 = vector.broadcast %341 : vector<2x8x1xf32> to vector<2x8x8xf32>
    %343 = arith.mulf %338, %342 : vector<2x8x8xf32>
    %344 = arith.truncf %343 : vector<2x8x8xf32> to vector<2x8x8xbf16>
    %345 = vector.extract_strided_slice %328 {offsets = [0, 0, 0], sizes = [2, 8, 16], strides = [1, 1, 1]} : vector<2x8x32xbf16> to vector<2x8x16xbf16>
    "tpu.trace_start"() <{level = 10 : i32, message = "bqk,bkd->bqd"}> : () -> ()
    %cst_138 = arith.constant dense<0.000000e+00> : vector<2x8x16xf32>
    %346 = tpu.matmul %344, %345, %cst_138 {dimension_numbers = #tpu.dot_dimension_numbers<[2], [1], [1], [2], [0, 0, 0, 1, 1, 2], [0], [0]>} : vector<2x8x8xbf16>, vector<2x8x16xbf16>, vector<2x8x16xf32> -> vector<2x8x16xf32>
    "tpu.trace_stop"() : () -> ()
    %347 = vector.extract_strided_slice %324 {offsets = [0, 0, 16], sizes = [2, 8, 16], strides = [1, 1, 1]} : vector<2x8x32xbf16> to vector<2x8x16xbf16>
    %348 = vector.extract_strided_slice %326 {offsets = [0, 0, 16], sizes = [2, 8, 16], strides = [1, 1, 1]} : vector<2x8x32xbf16> to vector<2x8x16xbf16>
    "tpu.trace_start"() <{level = 10 : i32, message = "bqd,bkd->bqk"}> : () -> ()
    %cst_139 = arith.constant dense<0.000000e+00> : vector<2x8x8xf32>
    %349 = tpu.matmul %347, %348, %cst_139 {dimension_numbers = #tpu.dot_dimension_numbers<[2], [2], [1], [1], [0, 0, 0, 1, 1, 1], [0], [0]>} : vector<2x8x16xbf16>, vector<2x8x16xbf16>, vector<2x8x8xf32> -> vector<2x8x8xf32>
    "tpu.trace_stop"() : () -> ()
    %350 = vector.broadcast %5 : vector<2x1x8xf32> to vector<2x8x8xf32>
    %351 = arith.addf %349, %350 : vector<2x8x8xf32>
    %cst_140 = arith.constant dense<0xFF800000> : vector<2x8xf32>
    %352 = vector.multi_reduction <maximumf>, %351, %cst_140 [2] : vector<2x8x8xf32> to vector<2x8xf32>
    %353 = vector.shape_cast %352 : vector<2x8xf32> to vector<2x8x1xf32>
    %354 = vector.broadcast %353 : vector<2x8x1xf32> to vector<2x8x8xf32>
    %355 = arith.subf %351, %354 : vector<2x8x8xf32>
    %356 = math.exp %355 : vector<2x8x8xf32>
    %cst_141 = arith.constant dense<0.000000e+00> : vector<2x8xf32>
    %357 = vector.multi_reduction <add>, %356, %cst_141 [2] : vector<2x8x8xf32> to vector<2x8xf32>
    %358 = vector.shape_cast %357 : vector<2x8xf32> to vector<2x8x1xf32>
    %359 = tpu.reciprocal %358 {approx = true} : vector<2x8x1xf32> -> vector<2x8x1xf32>
    %360 = vector.broadcast %359 : vector<2x8x1xf32> to vector<2x8x8xf32>
    %361 = arith.mulf %356, %360 : vector<2x8x8xf32>
    %362 = arith.truncf %361 : vector<2x8x8xf32> to vector<2x8x8xbf16>
    %363 = vector.extract_strided_slice %328 {offsets = [0, 0, 16], sizes = [2, 8, 16], strides = [1, 1, 1]} : vector<2x8x32xbf16> to vector<2x8x16xbf16>
    "tpu.trace_start"() <{level = 10 : i32, message = "bqk,bkd->bqd"}> : () -> ()
    %cst_142 = arith.constant dense<0.000000e+00> : vector<2x8x16xf32>
    %364 = tpu.matmul %362, %363, %cst_142 {dimension_numbers = #tpu.dot_dimension_numbers<[2], [1], [1], [2], [0, 0, 0, 1, 1, 2], [0], [0]>} : vector<2x8x8xbf16>, vector<2x8x16xbf16>, vector<2x8x16xf32> -> vector<2x8x16xf32>
    "tpu.trace_stop"() : () -> ()
    %365 = tpu.concatenate %346, %364 in 2 : vector<2x8x16xf32>, vector<2x8x16xf32> -> vector<2x8x32xf32>
    %366 = vector.shape_cast %365 : vector<2x8x32xf32> to vector<16x32xf32>
    %367 = arith.truncf %366 : vector<16x32xf32> to vector<16x32xbf16>
    %cst_143 = arith.constant dense<0.000000e+00> : vector<16x32xf32>
    %368 = tpu.matmul %367, %320, %cst_143 {dimension_numbers = #tpu.dot_dimension_numbers<[1], [0], [0], [1], [0, 0, 1, 1], [], []>} : vector<16x32xbf16>, vector<32x32xbf16>, vector<16x32xf32> -> vector<16x32xf32>
    %369 = vector.broadcast %322 : vector<1x32xf32> to vector<16x32xf32>
    %370 = arith.addf %368, %369 : vector<16x32xf32>
    %371 = arith.addf %274, %370 : vector<16x32xf32>
    %cst_144 = arith.constant dense<0.000000e+00> : vector<16xf32>
    %372 = vector.multi_reduction <add>, %371, %cst_144 [1] : vector<16x32xf32> to vector<16xf32>
    %373 = vector.shape_cast %372 : vector<16xf32> to vector<16x1xf32>
    %cst_145 = arith.constant 3.200000e+01 : f32
    %374 = vector.broadcast %cst_145 : f32 to vector<16x1xf32>
    %375 = arith.divf %373, %374 : vector<16x1xf32>
    %376 = vector.broadcast %375 : vector<16x1xf32> to vector<16x32xf32>
    %377 = arith.subf %371, %376 : vector<16x32xf32>
    %378 = arith.mulf %377, %377 : vector<16x32xf32>
    %cst_146 = arith.constant dense<0.000000e+00> : vector<16xf32>
    %379 = vector.multi_reduction <add>, %378, %cst_146 [1] : vector<16x32xf32> to vector<16xf32>
    %380 = vector.shape_cast %379 : vector<16xf32> to vector<16x1xf32>
    %cst_147 = arith.constant 3.200000e+01 : f32
    %381 = vector.broadcast %cst_147 : f32 to vector<16x1xf32>
    %382 = arith.divf %380, %381 : vector<16x1xf32>
    %383 = vector.broadcast %375 : vector<16x1xf32> to vector<16x32xf32>
    %384 = arith.subf %371, %383 : vector<16x32xf32>
    %cst_148 = arith.constant 9.99999997E-7 : f32
    %385 = vector.broadcast %cst_148 : f32 to vector<16x1xf32>
    %386 = arith.addf %382, %385 : vector<16x1xf32>
    %387 = math.rsqrt %386 : vector<16x1xf32>
    %388 = vector.broadcast %387 : vector<16x1xf32> to vector<16x32xf32>
    %389 = arith.mulf %384, %388 : vector<16x32xf32>
    %c0_149 = arith.constant 0 : index
    %c20 = arith.constant 20 : index
    %c0_150 = arith.constant 0 : index
    %390 = vector.load %arg9[%c0_149, %c20, %c0_150] : memref<1x26x96xf32, #tpu.memory_space<vmem>>, vector<1x1x32xf32>
    %391 = vector.shape_cast %390 : vector<1x1x32xf32> to vector<1x32xf32>
    %392 = vector.broadcast %391 : vector<1x32xf32> to vector<16x32xf32>
    %393 = arith.mulf %389, %392 : vector<16x32xf32>
    %c0_151 = arith.constant 0 : index
    %c21 = arith.constant 21 : index
    %c0_152 = arith.constant 0 : index
    %394 = vector.load %arg9[%c0_151, %c21, %c0_152] : memref<1x26x96xf32, #tpu.memory_space<vmem>>, vector<1x1x32xf32>
    %395 = vector.shape_cast %394 : vector<1x1x32xf32> to vector<1x32xf32>
    %396 = vector.broadcast %395 : vector<1x32xf32> to vector<16x32xf32>
    %397 = arith.addf %393, %396 : vector<16x32xf32>
    %c0_153 = arith.constant 0 : index
    %c64 = arith.constant 64 : index
    %c0_154 = arith.constant 0 : index
    %398 = vector.load %arg7[%c0_153, %c64, %c0_154] : memref<1x96x64xbf16, #tpu.memory_space<vmem>>, vector<1x32x64xbf16>
    %399 = vector.shape_cast %398 : vector<1x32x64xbf16> to vector<32x64xbf16>
    %c0_155 = arith.constant 0 : index
    %c208 = arith.constant 208 : index
    %c0_156 = arith.constant 0 : index
    %400 = vector.load %arg8[%c0_155, %c208, %c0_156] : memref<1x272x32xbf16, #tpu.memory_space<vmem>>, vector<1x64x32xbf16>
    %401 = vector.shape_cast %400 : vector<1x64x32xbf16> to vector<64x32xbf16>
    %402 = arith.truncf %397 : vector<16x32xf32> to vector<16x32xbf16>
    %cst_157 = arith.constant dense<0.000000e+00> : vector<16x64xf32>
    %403 = tpu.matmul %402, %399, %cst_157 {dimension_numbers = #tpu.dot_dimension_numbers<[1], [0], [0], [1], [0, 0, 1, 1], [], []>} : vector<16x32xbf16>, vector<32x64xbf16>, vector<16x64xf32> -> vector<16x64xf32>
    %c0_158 = arith.constant 0 : index
    %c22 = arith.constant 22 : index
    %c0_159 = arith.constant 0 : index
    %404 = vector.load %arg9[%c0_158, %c22, %c0_159] : memref<1x26x96xf32, #tpu.memory_space<vmem>>, vector<1x1x64xf32>
    %405 = vector.shape_cast %404 : vector<1x1x64xf32> to vector<1x64xf32>
    %406 = vector.broadcast %405 : vector<1x64xf32> to vector<16x64xf32>
    %407 = arith.addf %403, %406 : vector<16x64xf32>
    %cst_160 = arith.constant 0.000000e+00 : f32
    %408 = vector.broadcast %cst_160 : f32 to vector<16x64xf32>
    %409 = arith.maximumf %407, %408 : vector<16x64xf32>
    %410 = arith.truncf %409 : vector<16x64xf32> to vector<16x64xbf16>
    %cst_161 = arith.constant dense<0.000000e+00> : vector<16x32xf32>
    %411 = tpu.matmul %410, %401, %cst_161 {dimension_numbers = #tpu.dot_dimension_numbers<[1], [0], [0], [1], [0, 0, 1, 1], [], []>} : vector<16x64xbf16>, vector<64x32xbf16>, vector<16x32xf32> -> vector<16x32xf32>
    %c0_162 = arith.constant 0 : index
    %c23 = arith.constant 23 : index
    %c0_163 = arith.constant 0 : index
    %412 = vector.load %arg9[%c0_162, %c23, %c0_163] : memref<1x26x96xf32, #tpu.memory_space<vmem>>, vector<1x1x32xf32>
    %413 = vector.shape_cast %412 : vector<1x1x32xf32> to vector<1x32xf32>
    %414 = vector.broadcast %413 : vector<1x32xf32> to vector<16x32xf32>
    %415 = arith.addf %411, %414 : vector<16x32xf32>
    %416 = arith.addf %371, %415 : vector<16x32xf32>
    %cst_164 = arith.constant dense<0.000000e+00> : vector<16xf32>
    %417 = vector.multi_reduction <add>, %416, %cst_164 [1] : vector<16x32xf32> to vector<16xf32>
    %418 = vector.shape_cast %417 : vector<16xf32> to vector<16x1xf32>
    %cst_165 = arith.constant 3.200000e+01 : f32
    %419 = vector.broadcast %cst_165 : f32 to vector<16x1xf32>
    %420 = arith.divf %418, %419 : vector<16x1xf32>
    %421 = vector.broadcast %420 : vector<16x1xf32> to vector<16x32xf32>
    %422 = arith.subf %416, %421 : vector<16x32xf32>
    %423 = arith.mulf %422, %422 : vector<16x32xf32>
    %cst_166 = arith.constant dense<0.000000e+00> : vector<16xf32>
    %424 = vector.multi_reduction <add>, %423, %cst_166 [1] : vector<16x32xf32> to vector<16xf32>
    %425 = vector.shape_cast %424 : vector<16xf32> to vector<16x1xf32>
    %cst_167 = arith.constant 3.200000e+01 : f32
    %426 = vector.broadcast %cst_167 : f32 to vector<16x1xf32>
    %427 = arith.divf %425, %426 : vector<16x1xf32>
    %428 = vector.broadcast %420 : vector<16x1xf32> to vector<16x32xf32>
    %429 = arith.subf %416, %428 : vector<16x32xf32>
    %cst_168 = arith.constant 9.99999997E-7 : f32
    %430 = vector.broadcast %cst_168 : f32 to vector<16x1xf32>
    %431 = arith.addf %427, %430 : vector<16x1xf32>
    %432 = math.rsqrt %431 : vector<16x1xf32>
    %433 = vector.broadcast %432 : vector<16x1xf32> to vector<16x32xf32>
    %434 = arith.mulf %429, %433 : vector<16x32xf32>
    %c0_169 = arith.constant 0 : index
    %c24 = arith.constant 24 : index
    %c0_170 = arith.constant 0 : index
    %435 = vector.load %arg9[%c0_169, %c24, %c0_170] : memref<1x26x96xf32, #tpu.memory_space<vmem>>, vector<1x1x32xf32>
    %436 = vector.shape_cast %435 : vector<1x1x32xf32> to vector<1x32xf32>
    %437 = vector.broadcast %436 : vector<1x32xf32> to vector<16x32xf32>
    %438 = arith.mulf %434, %437 : vector<16x32xf32>
    %c0_171 = arith.constant 0 : index
    %c25 = arith.constant 25 : index
    %c0_172 = arith.constant 0 : index
    %439 = vector.load %arg9[%c0_171, %c25, %c0_172] : memref<1x26x96xf32, #tpu.memory_space<vmem>>, vector<1x1x32xf32>
    %440 = vector.shape_cast %439 : vector<1x1x32xf32> to vector<1x32xf32>
    %441 = vector.broadcast %440 : vector<1x32xf32> to vector<16x32xf32>
    %442 = arith.addf %438, %441 : vector<16x32xf32>
    %c0_173 = arith.constant 0 : index
    %c0_174 = arith.constant 0 : index
    %c0_175 = arith.constant 0 : index
    %443 = vector.load %arg10[%c0_173, %c0_174, %c0_175] : memref<1x16x32xf32, #tpu.memory_space<vmem>>, vector<1x16x32xf32>
    %444 = vector.shape_cast %443 : vector<1x16x32xf32> to vector<16x32xf32>
    %445 = vector.shape_cast %442 : vector<16x32xf32> to vector<1x16x32xf32>
    tpu.vector_store %arg10[%c0_173, %c0_174, %c0_175], %445 {strides = array<i32>} : memref<1x16x32xf32, #tpu.memory_space<vmem>>, vector<1x16x32xf32>,
    return
  }
  func.func @transform_0(%arg0: i32) -> (i32, i32, i32) {
    %c0_i32 = arith.constant 0 : i32
    %c0_i32_0 = arith.constant 0 : i32
    %c0_i32_1 = arith.constant 0 : i32
    %c0_i32_2 = arith.constant 0 : i32
    return %c0_i32, %c0_i32_0, %c0_i32_1 : i32, i32, i32
  }
  func.func @transform_1(%arg0: i32) -> (i32, i32, i32) {
    %c0_i32 = arith.constant 0 : i32
    %c0_i32_0 = arith.constant 0 : i32
    %c0_i32_1 = arith.constant 0 : i32
    %c0_i32_2 = arith.constant 0 : i32
    return %c0_i32, %c0_i32_0, %c0_i32_1 : i32, i32, i32
  }
  func.func @transform_2(%arg0: i32) -> (i32, i32) {
    %c0_i32 = arith.constant 0 : i32
    %c0_i32_0 = arith.constant 0 : i32
    %c0_i32_1 = arith.constant 0 : i32
    return %c0_i32, %c0_i32_0 : i32, i32
  }
  func.func @transform_3(%arg0: i32) -> (i32, i32, i32) {
    %c0_i32 = arith.constant 0 : i32
    %c0_i32_0 = arith.constant 0 : i32
    %c0_i32_1 = arith.constant 0 : i32
    return %arg0, %c0_i32, %c0_i32_0 : i32, i32, i32
  }
  func.func @transform_4(%arg0: i32) -> (i32, i32, i32) {
    %c0_i32 = arith.constant 0 : i32
    %c0_i32_0 = arith.constant 0 : i32
    %c0_i32_1 = arith.constant 0 : i32
    return %arg0, %c0_i32, %c0_i32_0 : i32, i32, i32
  }
  func.func @transform_5(%arg0: i32) -> (i32, i32, i32) {
    %c0_i32 = arith.constant 0 : i32
    %c0_i32_0 = arith.constant 0 : i32
    %c0_i32_1 = arith.constant 0 : i32
    return %arg0, %c0_i32, %c0_i32_0 : i32, i32, i32
  }
  func.func @transform_6(%arg0: i32) -> (i32, i32, i32) {
    %c0_i32 = arith.constant 0 : i32
    %c0_i32_0 = arith.constant 0 : i32
    %c0_i32_1 = arith.constant 0 : i32
    return %arg0, %c0_i32, %c0_i32_0 : i32, i32, i32
  }
  func.func @transform_7(%arg0: i32) -> (i32, i32, i32) {
    %c0_i32 = arith.constant 0 : i32
    %c0_i32_0 = arith.constant 0 : i32
    %c0_i32_1 = arith.constant 0 : i32
    return %arg0, %c0_i32, %c0_i32_0 : i32, i32, i32
  }
  func.func @transform_8(%arg0: i32) -> (i32, i32, i32) {
    %c0_i32 = arith.constant 0 : i32
    %c0_i32_0 = arith.constant 0 : i32
    %c0_i32_1 = arith.constant 0 : i32
    return %arg0, %c0_i32, %c0_i32_0 : i32, i32, i32
  }
  func.func @transform_9(%arg0: i32) -> (i32, i32, i32) {
    %c0_i32 = arith.constant 0 : i32
    %c0_i32_0 = arith.constant 0 : i32
    %c0_i32_1 = arith.constant 0 : i32
    return %arg0, %c0_i32, %c0_i32_0 : i32, i32, i32
  }
}

</mosaic_0001>

<bundles_post_ra>
// kernel: ensemble_forward.1
= control target key start
LH: loop header
LB: loop body
LE: loop exit
PB: predicated region body
PF: predicated region fallthrough
CT: control target
= control target key end

     0   :  { %s3701_s30 = smov 0   ;;  %s4247_s0 = inlined_call_operand.vmem [shape: f32[2,1,8], index: 0, kind: input, shape index: {}]   ;;  %s4248_s1 = inlined_call_operand.vmem [shape: f32[2,8,8], index: 1, kind: input, shape index: {}]   ;;  %s4249_s2 = inlined_call_operand.vmem [shape: f32[16,16], index: 2, kind: input, shape index: {}]   ;;  %s4250_s3 = inlined_call_operand.vmem [shape: f32[2,16,32], index: 3, kind: input, shape index: {}]   ;;  %s4251_s4 = inlined_call_operand.vmem [shape: f32[2,16,32], index: 4, kind: input, shape index: {}]   ;;  %s4252_s5 = inlined_call_operand.vmem [shape: bf16[2,64,96], index: 5, kind: input, shape index: {}]   ;;  %s4253_s6 = inlined_call_operand.vmem [shape: bf16[2,96,64], index: 6, kind: input, shape index: {}]   ;;  %s4254_s7 = inlined_call_operand.vmem [shape: bf16[2,272,32], index: 7, kind: input, shape index: {}]   ;;  %s4255_s8 = inlined_call_operand.vmem [shape: f32[2,26,96], index: 8, kind: input, shape index: {}]   ;;  %s4256_s9 = inlined_call_operand.vmem [shape: f32[2,16,32], index: 9, kind: output, shape index: {}]  }
   0x1 LB: > { %s3051_s10 = sadd.s32 4294967295, %s3640_s30   ;;  %p3055_p0 = scmp.ge.s32.totalorder %s3640_s30, 1  ;;  %s3640_s30 = sphi %s3701_s30, %s19_s30  }
   0x2   : > { %p337_p1 = scmp.lt.s32.totalorder %s3640_s30, 3 }
   0x4   : > { %p338_p2 = pnand %p3055_p0, %p337_p1 }
   0x5   : > { %p398_p3 = scmp.lt.s32.totalorder (!%p338_p2), %s3051_s10, 1  ;;  %s3646_s16 = smov (!%p338_p2), 64  }
   0x6   : > { %341 = sbr.rel (%p338_p2) target bundleno = 7656 (0x1de8), region = 56  ;;  %s3647_s17 = smov (!%p338_p2), 80  }
   0x7   : > { %s3649_s21 = smov (!%p338_p2), 48   ;;  %s3650_s22 = smov (!%p338_p2), 16  }
   0xb   : > { %v3642_v0 = vmov 0.0   ;;  %vm3643_vm0 = vmmov 0   ;;  %s4258_s10 = smov (!%p398_p3, %s3051_s10), 1  ;;  %v448_v1 = vld [vmem:[%s4249_s2] sm:$0xff]  ;;  %v449_v2 = vld [vmem:[%s4249_s2 + $0x8] sm:$0xff]  ;;  %vm459_vm1 = vcmask 130048   ;;  %v630_v60 = vlaneseq }
   0xc   : > { %3251 = vmatprep.subr.bf16.mxu1 %v3642_v0  ;;  %3253 = vmatprep.mubr.msk.bf16.mxu1 %vm3643_vm0, %v3642_v0  ;;  %s3498_s11 = smul.u32 136, %s4258_s10  ;;  %v452_v4 = vpack.c.bf16 %v449_v2, %v448_v1  ;;  %s3735_s19 = sshll.u32 %s4258_s10, 4  ;;  %vm513_vm2 = vcmask 261120   ;;  %v434_v61 = vld [vmem:[%s4247_s0] sm:$0x1]  ;;  %vm738_vm5 = vcmask 64512  }
   0xd   : > { %3265 = vmatprep.subr.bf16.mxu0 %v3642_v0  ;;  %3267 = vmatprep.mubr.msk.bf16.mxu0 %vm3643_vm0, %v3642_v0  ;;  %s3161_s20 = sshll.u32 %s4258_s10, 5  ;;  %s402_s23 = scalar_lea.vmem %s4250_s3, %s3735_s19  ;;  %v631_v62 = vshrl.u32 %v630_v60, 7  ;;  %vm436_vm3 = vcmp.gt.f32.partialorder %v434_v61, 0.5  ;;  %v435_v63 = vld [vmem:[%s4247_s0 + $0x1] sm:$0x1]  ;;  %vm768_vm6 = vcmask 1043456  }
   0xe   : > { %s3727_s18 = scalar_lea.vmem %s4254_s7, %s3498_s11  ;;  %s3747_s26 = scalar_lea.vmem %s4255_s8, %s3161_s20  ;;  %v446_v5 = vld [vmem:[%s402_s23] sm:$0xff]  ;;  %v447_v10 = vld [vmem:[%s402_s23 + $0x8] sm:$0xff]  ;;  %v3645_v2 = vmov -1e+09   ;;  %vm437_vm4 = vcmp.gt.f32.partialorder %v435_v63, 0.5  ;;  %vm1299_vm7 = vcmask 523264  }
   0xf   : > { %v3531_v3 = vld [vmem:[%s3727_s18] sm:$0xff]   ;;  %s3767_s29 = scalar_lea.vmem %s4252_s5, %s3161_s20  ;;  %s3644_s11 = smov 96   ;;  %v632_v1 = vsub.s32 0, %v631_v62 }
  0x10   : > { %3252 = vmatpush3.bf16.msra.mxu1 %v3531_v3  ;;  %v3070_v7 = vld [vmem:[%s3747_s26] ss:$0 sm:$0xff]  ;;  %v3532_v28 = vld [vmem:[%s3767_s29 + $0x8] sm:$0xff]   ;;  %v3071_v38 = vld [vmem:[%s3747_s26 + $0x1] ss:$0 sm:$0xff]  ;;  %v438_v3 = vsel %vm436_vm3, 0.0, %v3645_v2  ;;  %s407_s25 = scalar_lea.vmem %s4251_s4, %s3735_s19 }
  0x11   : > { %3257 = vmatprep.subr.bf16.mxu1 %v3642_v0  ;;  %v3533_v29 = vld [vmem:[%s3767_s29] sm:$0xff]   ;;  %s3648_s20 = smov 112   ;;  %s3497_s27 = smul.u32 48, %s4258_s10 }
  0x12   : > { %v3072_v42 = vld [vmem:[%s3747_s26 + $0x2] ss:$0 sm:$0xff]  ;;  %v3073_v47 = vld [vmem:[%s3747_s26 + $0x3] ss:$0 sm:$0xff] }
  0x13   : > { %3254 = vmatmul.mubr.msk.bf16.vlgmr.msra.gmra.mxu1 %vm459_vm1, %v452_v4  ;;  %v3806_v4 = vrot.slane %v438_v3, %v632_v1  ;;  %s3920_s13 = scalar_lea.vmem %s4253_s6, %s3497_s27 }
  0x14   : > { %3261 = vmatprep.mubr.msk.bf16.mxu1 %vm3643_vm0, %v3642_v0  ;;  %3258 = vmatpush3.bf16.msra.mxu1 %v3532_v28 }
  0x15   : > { %3259 = vmatprep.subr.bf16.mxu1 %v3642_v0 }
  0x18   : > { %3260 = vmatpush3.bf16.msra.mxu1 %v3533_v29 }
  0x19   : > { %3271 = vmatprep.subr.bf16.mxu1 %v3642_v0 }
  0xd3   : > { %v497_v6 = vpop.f32.mrf.mxu1 }
  0xd4   : > { %v504_v8 = vadd.f32 %v497_v6, %v446_v5  ;;  %v439_v5 = vsel %vm437_vm4, 0.0, %v3645_v2 }
  0xd5   : > { %v3255_v9 = vpop.f32.mrf.mxu1 }
  0xd6   : > { %v3750_v11 = vadd.f32 %v3070_v7, %v504_v8  ;;  %v3810_v8 = vrot.slane %v439_v5, %v632_v1 }
  0xd7   : > { %v500_v12 = vpop.f32.mrf.mxu1 }
  0xd8   : > { %v505_v13 = vadd.f32 %v500_v12, %v447_v10  ;;  %v514_v14 = vsel %vm513_vm2, %v3750_v11, 0.0 }
  0xd9   : > { %v3256_v15 = vpop.f32.mrf.mxu1  ;;  %515 = vadd.xlane.f32.xlu0 %v514_v14 }
  0xda   : > { %v3754_v16 = vadd.f32 %v3070_v7, %v505_v13 }
  0xdc   : > { %v517_v17 = vsel %vm513_vm2, %v3754_v16, 0.0 }
  0xdd   : > { %518 = vadd.xlane.f32.xlu0 %v517_v17 }
 0x162   : > { %v516_v18 = vpop.xlane.xlu0 %515 }
 0x163   : > { %v521_v19 = vmul.f32 0.03125, %v516_v18 }
 0x165   : > { %v523_v20 = vsub.f32 %v3750_v11, %v521_v19 }
 0x166   : > { %v519_v21 = vpop.xlane.xlu0 %518 }
 0x167   : > { %v522_v22 = vmul.f32 0.03125, %v519_v21  ;;  %v525_v23 = vmul.f32 %v523_v20, %v523_v20 }
 0x169   : > { %v524_v24 = vsub.f32 %v3754_v16, %v522_v22  ;;  %v527_v25 = vsel %vm513_vm2, %v525_v23, 0.0 }
 0x16a   : > { %528 = vadd.xlane.f32.xlu1 %v527_v25 }
 0x16b   : > { %v526_v26 = vmul.f32 %v524_v24, %v524_v24 }
 0x16d   : > { %v530_v27 = vsel %vm513_vm2, %v526_v26, 0.0 }
 0x16e   : > { %531 = vadd.xlane.f32.xlu1 %v530_v27 }
 0x1f3   : > { %v529_v30 = vpop.xlane.xlu1 %528 }
 0x1f4   : > { %v533_v31 = vmul.f32 0.03125, %v529_v30 }
 0x1f6   : > { %v535_v32 = vadd.f32 1e-06, %v533_v31 }
 0x1f7   : > { %v532_v33 = vpop.xlane.xlu1 %531 }
 0x1f8   : > { %3558 = vrsqrt.f32 %v535_v32  ;;  %v534_v34 = vmul.f32 0.03125, %v532_v33 }
 0x1fa   : > { %v536_v35 = vadd.f32 1e-06, %v534_v34 }
 0x1fc   : > { %3560 = vrsqrt.f32 %v536_v35 }
 0x205   : > { %v3559_v36 = vpop.eup %3558 }
 0x206   : > { %v539_v37 = vmul.f32 %v3559_v36, %v523_v20 }
 0x208   : > { %v546_v41 = vmul.f32 %v3071_v38, %v539_v37 }
 0x209   : > { %v3561_v39 = vpop.eup %3560 }
 0x20a   : > { %v540_v40 = vmul.f32 %v3561_v39, %v524_v24  ;;  %v553_v44 = vadd.f32 %v3072_v42, %v546_v41 }
 0x20c   : > { %v547_v43 = vmul.f32 %v3071_v38, %v540_v40 }
 0x20e   : > { %v554_v45 = vadd.f32 %v3072_v42, %v547_v43 }
 0x210   : > { %v563_v46 = vpack.c.bf16 %v554_v45, %v553_v44 }
 0x212   : > { %3262 = vmatmul.mubr.msk.bf16.vlgmr.msra.gmra.mxu1 %vm513_vm2, %v563_v46 }
 0x213   : > { %3273 = vmatprep.mubr.msk.bf16.mxu1 %vm3643_vm0, %v3642_v0 }
 0x2d2   : > { %v618_v48 = vpop.f32.mrf.mxu1 }
 0x2d3   : > { %v619_v49 = vadd.f32 %v3073_v47, %v618_v48 }
 0x2d4   : > { %v3263_v50 = vpop.f32.mrf.mxu1 }
 0x2d5   : > { %v3779_v51 = vpack.c.bf16 %v619_v49, %v619_v49 }
 0x2d6   : > { %v621_v52 = vpop.f32.mrf.mxu1 }
 0x2d7   : > { %v622_v53 = vadd.f32 %v3073_v47, %v621_v52  ;;  %641 = vrot.lane.b32.xlu0 %v3779_v51, %s3644_s11 }
 0x2d8   : > { %v3264_v54 = vpop.f32.mrf.mxu1 }
 0x2d9   : > { %v3783_v55 = vpack.c.bf16 %v622_v53, %v622_v53 }
 0x2db   : > { %690 = vrot.lane.b32.xlu1 %v3783_v55, %s3644_s11 }
 0x349   : > { %v642_v56 = vpop.permute.xlu0 %641 }
 0x34a   : > { %v647_v57 = vsel %vm459_vm1, %v642_v56, 0 }
 0x34b   : > { %3266 = vmatpush3.bf16.xpose.msra.mxu0 %v647_v57 }
 0x34c   : > { %3277 = vmatprep.subr.bf16.mxu0 %v3642_v0 }
 0x34d   : > { %v691_v58 = vpop.permute.xlu1 %690 }
 0x34e   : > { %v696_v59 = vsel %vm459_vm1, %v691_v58, 0 }
 0x34f   : > { %3272 = vmatpush3.bf16.xpose.msra.mxu1 %v696_v59 }
 0x350   : > { %3283 = vmatprep.subr.bf16.mxu1 %v3642_v0 }
 0x352   : > { %3268 = vmatmul.mubr.msk.bf16.vlgmr.msra.gmra.mxu0 %vm459_vm1, %v3779_v51 }
 0x353   : > { %3279 = vmatprep.mubr.msk.bf16.mxu0 %vm3643_vm0, %v3642_v0 }
 0x356   : > { %3274 = vmatmul.mubr.msk.bf16.vlgmr.msra.gmra.mxu1 %vm459_vm1, %v3783_v55 }
 0x357   : > { %3285 = vmatprep.mubr.msk.bf16.mxu1 %vm3643_vm0, %v3642_v0 }
 0x412   : > { %v683_v6 = vpop.f32.mrf.mxu0 }
 0x413   : > { %v684_v7 = vadd.f32 %v683_v6, %v3806_v4 }
 0x414   : > { %v3269_v9 = vpop.f32.mrf.mxu0 }
 0x415   : > { %v739_v10 = vsel %vm738_vm5, %v684_v7, -inf }
 0x416   : > { %v686_v12 = vpop.f32.mrf.mxu0  ;;  %740 = vmax.xlane.f32.xlu1 %v739_v10  ;;  %v732_v13 = vpop.f32.mrf.mxu1 }
 0x417   : > { %v733_v14 = vadd.f32 %v732_v13, %v3810_v8 }
 0x418   : > { %v3270_v15 = vpop.f32.mrf.mxu0  ;;  %v3275_v17 = vpop.f32.mrf.mxu1 }
 0x419   : > { %v742_v18 = vsel %vm738_vm5, %v733_v14, -inf }
 0x41a   : > { %743 = vmax.xlane.f32.xlu0 %v742_v18  ;;  %v735_v19 = vpop.f32.mrf.mxu1 }
 0x41c   : > { %v3276_v20 = vpop.f32.mrf.mxu1 }
 0x427   : > { %812 = vrot.lane.b32.xlu1 %v3783_v55, %s3646_s16 }
 0x42b   : > { %862 = vrot.lane.b32.xlu1 %v3779_v51, %s3647_s17 }
 0x49f   : > { %v741_v21 = vpop.xlane.xlu1 %740 }
 0x4a0   : > { %v745_v22 = vsub.f32 %v684_v7, %v741_v21 }
 0x4a2   : > { %v747_v23 = vmul.f32 1.442695, %v745_v22 }
 0x4a3   : > { %v813_v24 = vpop.permute.xlu1 %812  ;;  %v744_v25 = vpop.xlane.xlu0 %743 }
 0x4a4   : > { %3562 = vpow2.f32 %v747_v23  ;;  %v818_v26 = vsel %vm768_vm6, %v813_v24, 0  ;;  %v746_v27 = vsub.f32 %v733_v14, %v744_v25 }
 0x4a5   : > { %3284 = vmatpush3.bf16.msra.mxu1 %v818_v26 }
 0x4a6   : > { %v749_v28 = vmul.f32 1.442695, %v746_v27  ;;  %3295 = vmatprep.subr.bf16.mxu1 %v3642_v0 }
 0x4a7   : > { %v863_v33 = vpop.permute.xlu1 %862 }
 0x4a8   : > { %3564 = vpow2.f32 %v749_v28  ;;  %v868_v42 = vsel %vm459_vm1, %v863_v33, 0  ;;  %v3534_v33 = vld [vmem:[%s3727_s18 + $0x10] sm:$0xff]  }
 0x4b1   : > { %v3563_v29 = vpop.eup %3562 }
 0x4b2   : > { %v751_v30 = vsel %vm738_vm5, %v3563_v29, 0.0 }
 0x4b3   : > { %752 = vadd.xlane.f32.xlu0 %v751_v30 }
 0x4b5   : > { %v3565_v31 = vpop.eup %3564 }
 0x4b6   : > { %v754_v32 = vsel %vm738_vm5, %v3565_v31, 0.0 }
 0x4b7   : > { %755 = vadd.xlane.f32.xlu1 %v754_v32 }
 0x4c8   : > { %912 = vrot.lane.b32.xlu1 %v3783_v55, %s3647_s17 }
 0x4c9   : > { %763 = vrot.lane.b32.xlu0 %v3779_v51, %s3646_s16 }
 0x4cc   : > { %910 = vrot.lane.b32.xlu1 %v3783_v55, %s3648_s20 }
 0x4cd   : > { %860 = vrot.lane.b32.xlu0 %v3779_v51, %s3648_s20 }
 0x53c   : > { %v753_v34 = vpop.xlane.xlu0 %752 }
 0x53d   : > { %3566 = vrcp.f32 %v753_v34  ;;  %v3535_v34 = vld [vmem:[%s3727_s18 + $0x8] sm:$0xff]  }
 0x540   : > { %v756_v35 = vpop.xlane.xlu1 %755  ;;  %v764_v36 = vpop.permute.xlu0 %763 }
 0x541   : > { %3568 = vrcp.f32 %v756_v35  ;;  %v770_v37 = vsel %vm768_vm6, %v764_v36, 0 }
 0x542   : > { %3278 = vmatpush3.bf16.msra.mxu0 %v770_v37 }
 0x543   : > { %3289 = vmatprep.subr.bf16.mxu0 %v3642_v0 }
 0x544   : > { %v913_v44 = vpop.permute.xlu1 %912  ;;  %v861_v47 = vpop.permute.xlu0 %860 }
 0x545   : > { %v918_v46 = vsel %vm459_vm1, %v913_v44, 0 }
 0x548   : > { %v911_v48 = vpop.permute.xlu1 %910 }
 0x54a   : > { %v3567_v38 = vpop.eup %3566 }
 0x54b   : > { %v759_v39 = vmul.f32 %v3567_v38, %v3563_v29 }
 0x54d   : > { %v761_v40 = vpack.c.bf16 %v759_v39, %v759_v39 }
 0x54e   : > { %v3569_v41 = vpop.eup %3568 }
 0x54f   : > { %3280 = vmatmul.mubr.msk.bf16.vlgmr.msra.gmra.mxu0 %vm738_vm5, %v761_v40  ;;  %v760_v43 = vmul.f32 %v3569_v41, %v3565_v31 }
 0x550   : > { %3290 = vmatpush3.bf16.xpose.msra.mxu0 %v868_v42  ;;  %3291 = vmatprep.mubr.msk.bf16.mxu0 %vm3643_vm0, %v3642_v0 }
 0x551   : > { %v762_v45 = vpack.c.bf16 %v760_v43, %v760_v43  ;;  %3301 = vmatprep.subr.bf16.mxu0 %v3642_v0 }
 0x553   : > { %3286 = vmatmul.mubr.msk.bf16.vlgmr.msra.gmra.mxu1 %vm738_vm5, %v762_v45 }
 0x554   : > { %3296 = vmatpush3.bf16.xpose.msra.mxu1 %v918_v46  ;;  %3297 = vmatprep.mubr.msk.bf16.mxu1 %vm3643_vm0, %v3642_v0 }
 0x555   : > { %3307 = vmatprep.subr.bf16.mxu1 %v3642_v0 }
 0x557   : > { %3292 = vmatmul.mubr.msk.bf16.vlgmr.msra.gmra.mxu0 %vm459_vm1, %v861_v47 }
 0x558   : > { %3303 = vmatprep.mubr.msk.bf16.mxu0 %vm3643_vm0, %v3642_v0 }
 0x55b   : > { %3298 = vmatmul.mubr.msk.bf16.vlgmr.msra.gmra.mxu1 %vm459_vm1, %v911_v48 }
 0x55c   : > { %3309 = vmatprep.mubr.msk.bf16.mxu1 %vm3643_vm0, %v3642_v0 }
 0x60f   : > { %v3849_v49 = vpop.f32.mrf.mxu0 }
 0x611   : > { %v3281_v50 = vpop.f32.mrf.mxu0 }
 0x613   : > { %v809_v52 = vpop.f32.mrf.mxu0  ;;  %v3851_v53 = vpop.f32.mrf.mxu1 }
 0x614   : > { %v3085_v52 = vld [vmem:[%s3747_s26 + $0x4] ss:$0 sm:$0xff] }
 0x615   : > { %v3282_v54 = vpop.f32.mrf.mxu0  ;;  %v3287_v56 = vpop.f32.mrf.mxu1 }
 0x617   : > { %v857_v57 = vpop.f32.mrf.mxu1  ;;  %v904_v58 = vpop.f32.mrf.mxu0 }
 0x618   : > { %v905_v59 = vadd.f32 %v904_v58, %v3806_v4 }
 0x619   : > { %v3288_v60 = vpop.f32.mrf.mxu1  ;;  %v3293_v61 = vpop.f32.mrf.mxu0 }
 0x61a   : > { %v960_v62 = vsel %vm738_vm5, %v905_v59, -inf }
 0x61b   : > { %961 = vmax.xlane.f32.xlu0 %v960_v62  ;;  %v907_v63 = vpop.f32.mrf.mxu0  ;;  %v954_v1 = vpop.f32.mrf.mxu1  ;;  %v3898_v62 = vld [vmem:[%s407_s25] sm:$0xff] }
 0x61c   : > { %v955_v3 = vadd.f32 %v954_v1, %v3810_v8  ;;  %v1388_v63 = vsel %vm513_vm2, %v3898_v62, 0.0  ;;  %v3904_v1 = vld [vmem:[%s407_s25 + $0x8] sm:$0xff] }
 0x61d   : > { %v3294_v5 = vpop.f32.mrf.mxu0  ;;  %v3299_v6 = vpop.f32.mrf.mxu1 }
 0x61e   : > { %v963_v7 = vsel %vm738_vm5, %v955_v3, -inf }
 0x61f   : > { %964 = vmax.xlane.f32.xlu1 %v963_v7  ;;  %v957_v9 = vpop.f32.mrf.mxu1 }
 0x621   : > { %v3300_v10 = vpop.f32.mrf.mxu1 }
 0x630   : > { %1032 = vrot.lane.b32.xlu1 %v3783_v55, %s3649_s21 }
 0x6a4   : > { %v962_v12 = vpop.xlane.xlu0 %961 }
 0x6a5   : > { %v966_v13 = vsub.f32 %v905_v59, %v962_v12 }
 0x6a7   : > { %v968_v14 = vmul.f32 1.442695, %v966_v13 }
 0x6a8   : > { %v965_v15 = vpop.xlane.xlu1 %964 }
 0x6a9   : > { %3570 = vpow2.f32 %v968_v14  ;;  %v967_v17 = vsub.f32 %v955_v3, %v965_v15  ;;  %v1391_v3 = vsel %vm513_vm2, %v3904_v1, 0.0 }
 0x6ab   : > { %v970_v18 = vmul.f32 1.442695, %v967_v17 }
 0x6ac   : > { %v1033_v19 = vpop.permute.xlu1 %1032 }
 0x6ad   : > { %3572 = vpow2.f32 %v970_v18  ;;  %v1038_v20 = vsel %vm768_vm6, %v1033_v19, 0 }
 0x6ae   : > { %3308 = vmatpush3.bf16.msra.mxu1 %v1038_v20 }
 0x6af   : > { %3321 = vmatprep.subr.bf16.mxu1 %v3642_v0 }
 0x6b6   : > { %v3571_v21 = vpop.eup %3570 }
 0x6b7   : > { %v972_v22 = vsel %vm738_vm5, %v3571_v21, 0.0 }
 0x6b8   : > { %973 = vadd.xlane.f32.xlu0 %v972_v22 }
 0x6ba   : > { %v3573_v23 = vpop.eup %3572 }
 0x6bb   : > { %v975_v55 = vsel %vm738_vm5, %v3573_v23, 0.0 }
 0x6bc   : > { %976 = vadd.xlane.f32.xlu0 %v975_v55 }
 0x6d2   : > { %984 = vrot.lane.b32.xlu0 %v3779_v51, %s3649_s21 }
 0x741   : > { %v974_v24 = vpop.xlane.xlu0 %973 }
 0x742   : > { %3574 = vrcp.f32 %v974_v24 }
 0x745   : > { %v977_v25 = vpop.xlane.xlu0 %976 }
 0x746   : > { %3576 = vrcp.f32 %v977_v25 }
 0x749   : > { %v985_v26 = vpop.permute.xlu0 %984 }
 0x74a   : > { %v990_v27 = vsel %vm768_vm6, %v985_v26, 0  ;;  %v3536_v26 = vld [vmem:[%s3920_s13 + $0x8] sm:$0xff]  }
 0x74b   : > { %3302 = vmatpush3.bf16.msra.mxu0 %v990_v27  ;;  %v3537_v27 = vld [vmem:[%s3920_s13] sm:$0xff]  }
 0x74c   : > { %3313 = vmatprep.subr.bf16.mxu0 %v3642_v0 }
 0x74f   : > { %v3575_v28 = vpop.eup %3574 }
 0x750   : > { %v980_v29 = vmul.f32 %v3575_v28, %v3571_v21  ;;  %v3540_v28 = vld [vmem:[%s3727_s18 + $0x30] sm:$0xff]  }
 0x752   : > { %v982_v30 = vpack.c.bf16 %v980_v29, %v980_v29 }
 0x753   : > { %v3577_v31 = vpop.eup %3576 }
 0x754   : > { %3304 = vmatmul.mubr.msk.bf16.vlgmr.msra.gmra.mxu0 %vm738_vm5, %v982_v30  ;;  %v981_v32 = vmul.f32 %v3577_v31, %v3573_v23 }
 0x755   : > { %3317 = vmatprep.mubr.msk.bf16.mxu0 %vm3643_vm0, %v3642_v0  ;;  %3314 = vmatpush3.bf16.msra.mxu0 %v3534_v33 }
 0x756   : > { %v983_v51 = vpack.c.bf16 %v981_v32, %v981_v32  ;;  %3315 = vmatprep.subr.bf16.mxu0 %v3642_v0 }
 0x758   : > { %3310 = vmatmul.mubr.msk.bf16.vlgmr.msra.gmra.mxu1 %vm738_vm5, %v983_v51 }
 0x759   : > { %3325 = vmatprep.mubr.msk.bf16.mxu1 %vm3643_vm0, %v3642_v0  ;;  %3316 = vmatpush3.bf16.msra.mxu0 %v3535_v34 }
 0x75a   : > { %3329 = vmatprep.subr.bf16.mxu0 %v3642_v0  ;;  %3322 = vmatpush3.bf16.msra.mxu1 %v3536_v26 }
 0x75b   : > { %3323 = vmatprep.subr.bf16.mxu1 %v3642_v0 }
 0x75e   : > { %3324 = vmatpush3.bf16.msra.mxu1 %v3537_v27 }
 0x75f   : > { %3341 = vmatprep.subr.bf16.mxu1 %v3642_v0 }
 0x814   : > { %v1026_v35 = vpop.f32.mrf.mxu0 }
 0x816   : > { %v3305_v36 = vpop.f32.mrf.mxu0 }
 0x818   : > { %v1029_v37 = vpop.f32.mrf.mxu0  ;;  %v1074_v38 = vpop.f32.mrf.mxu1 }
 0x819   : > { %v3516_v39 = vpack.i.bf16 %v1074_v38, %v1026_v35 }
 0x81a   : > { %v3306_v40 = vpop.f32.mrf.mxu0  ;;  %v3311_v41 = vpop.f32.mrf.mxu1 }
 0x81b   : > { %3517 = vrot.lane.b32.xlu1 %v3516_v39, %s3650_s22 }
 0x81c   : > { %v1077_v42 = vpop.f32.mrf.mxu1 }
 0x81d   : > { %v3089_v42 = vld [vmem:[%s3747_s26 + $0x5] ss:$0 sm:$0xff] }
 0x81e   : > { %v3312_v43 = vpop.f32.mrf.mxu1 }
 0x88d   : > { %v3518_v44 = vpop.permute.xlu1 %3517 }
 0x88e   : > { %v3520_v45 = vunpack.i.h.bf16 %v3518_v44  ;;  %v3519_v46 = vunpack.i.l.bf16 %v3518_v44 }
 0x890   : > { %v1089_v47 = vsel %vm459_vm1, %v3851_v53, %v3520_v45  ;;  %v1088_v48 = vsel %vm459_vm1, %v3849_v49, %v3519_v46  ;;  %v3090_v46 = vld [vmem:[%s3747_s26 + $0x6] ss:$0 sm:$0xff] }
 0x891   : > { %v1090_v50 = vpack.c.bf16 %v1089_v47, %v1088_v48 }
 0x893   : > { %3318 = vmatmul.mubr.msk.bf16.vlgmr.msra.gmra.mxu0 %vm513_vm2, %v1090_v50 }
 0x894   : > { %3337 = vmatprep.mubr.msk.bf16.mxu0 %vm3643_vm0, %v3642_v0  ;;  %3330 = vmatpush3.bf16.msra.mxu0 %v3540_v28 }
 0x895   : > { %3331 = vmatprep.subr.bf16.mxu0 %v3642_v0 }
 0x953   : > { %v1144_v54 = vpop.f32.mrf.mxu0 }
 0x954   : > { %v1145_v56 = vadd.f32 %v3085_v52, %v1144_v54 }
 0x955   : > { %v3319_v57 = vpop.f32.mrf.mxu0 }
 0x956   : > { %v3887_v58 = vadd.f32 %v1145_v56, %v3750_v11  ;;  %v3538_v56 = vld [vmem:[%s3767_s29 + $0x18] sm:$0xff]   ;;  %v3103_v57 = vld [vmem:[%s3747_s26 + $0xb] ss:$0 sm:$0xff] }
 0x957   : > { %v1147_v59 = vpop.f32.mrf.mxu0 }
 0x958   : > { %v1148_v60 = vadd.f32 %v3085_v52, %v1147_v59  ;;  %v1153_v53 = vsel %vm513_vm2, %v3887_v58, 0.0 }
 0x959   : > { %1154 = vadd.xlane.f32.xlu1 %v1153_v53  ;;  %v3320_v49 = vpop.f32.mrf.mxu0 }
 0x95a   : > { %v3896_v61 = vadd.f32 %v1148_v60, %v3754_v16 }
 0x95c   : > { %v1156_v11 = vsel %vm513_vm2, %v3896_v61, 0.0 }
 0x95d   : > { %1157 = vadd.xlane.f32.xlu0 %v1156_v11  ;;  %v3539_v11 = vld [vmem:[%s3767_s29 + $0x10] sm:$0xff]  }
 0x961   : > { %1389 = vadd.xlane.f32.xlu0 %v1388_v63  ;;  %v3104_v63 = vld [vmem:[%s3747_s26 + $0xc] ss:$0 sm:$0xff] }
 0x965   : > { %1392 = vadd.xlane.f32.xlu0 %v1391_v3 }
 0x9e2   : > { %v1155_v5 = vpop.xlane.xlu1 %1154 }
 0x9e3   : > { %v1159_v6 = vmul.f32 0.03125, %v1155_v5 }
 0x9e5   : > { %v1161_v16 = vsub.f32 %v3887_v58, %v1159_v6 }
 0x9e6   : > { %v1158_v7 = vpop.xlane.xlu0 %1157 }
 0x9e7   : > { %v1160_v9 = vmul.f32 0.03125, %v1158_v7  ;;  %v1163_v10 = vmul.f32 %v1161_v16, %v1161_v16  ;;  %v3541_v7 = vld [vmem:[%s3727_s18 + $0x28] sm:$0xff]  }
 0x9e8   : > { %3332 = vmatpush3.bf16.msra.mxu0 %v3541_v7 }
 0x9e9   : > { %v1162_v12 = vsub.f32 %v3896_v61, %v1160_v9  ;;  %v1165_v13 = vsel %vm513_vm2, %v1163_v10, 0.0  ;;  %3333 = vmatprep.subr.bf16.mxu0 %v3642_v0  ;;  %v3542_v9 = vld [vmem:[%s3727_s18 + $0x20] sm:$0xff]   ;;  %v3543_v10 = vld [vmem:[%s3727_s18 + $0x18] sm:$0xff]  }
 0x9ea   : > { %1166 = vadd.xlane.f32.xlu1 %v1165_v13  ;;  %v1390_v14 = vpop.xlane.xlu0 %1389 }
 0x9eb   : > { %v1394_v15 = vmul.f32 0.03125, %v1390_v14  ;;  %v1164_v17 = vmul.f32 %v1162_v12, %v1162_v12 }
 0x9ec   : > { %3334 = vmatpush3.bf16.msra.mxu0 %v3542_v9 }
 0x9ed   : > { %v1396_v18 = vsub.f32 %v3898_v62, %v1394_v15  ;;  %v1168_v19 = vsel %vm513_vm2, %v1164_v17, 0.0  ;;  %3335 = vmatprep.subr.bf16.mxu0 %v3642_v0 }
 0x9ee   : > { %1169 = vadd.xlane.f32.xlu0 %v1168_v19  ;;  %v1393_v20 = vpop.xlane.xlu0 %1392 }
 0x9ef   : > { %v1395_v21 = vmul.f32 0.03125, %v1393_v20  ;;  %v1398_v22 = vmul.f32 %v1396_v18, %v1396_v18  ;;  %v3105_v20 = vld [vmem:[%s3747_s26 + $0xd] ss:$0 sm:$0xff] }
 0x9f0   : > { %3336 = vmatpush3.bf16.msra.mxu0 %v3543_v10 }
 0x9f1   : > { %v1397_v23 = vsub.f32 %v3904_v1, %v1395_v21  ;;  %v1400_v55 = vsel %vm513_vm2, %v1398_v22, 0.0  ;;  %3355 = vmatprep.subr.bf16.mxu0 %v3642_v0 }
 0x9f2   : > { %1401 = vadd.xlane.f32.xlu1 %v1400_v55 }
 0x9f3   : > { %v1399_v24 = vmul.f32 %v1397_v23, %v1397_v23 }
 0x9f5   : > { %v1403_v25 = vsel %vm513_vm2, %v1399_v24, 0.0 }
 0x9f6   : > { %1404 = vadd.xlane.f32.xlu0 %v1403_v25 }
 0xa73   : > { %v1167_v29 = vpop.xlane.xlu1 %1166 }
 0xa74   : > { %v1171_v30 = vmul.f32 0.03125, %v1167_v29 }
 0xa76   : > { %v1173_v31 = vadd.f32 1e-06, %v1171_v30 }
 0xa77   : > { %v1170_v32 = vpop.xlane.xlu0 %1169 }
 0xa78   : > { %3578 = vrsqrt.f32 %v1173_v31  ;;  %v1172_v51 = vmul.f32 0.03125, %v1170_v32 }
 0xa7a   : > { %v1174_v33 = vadd.f32 1e-06, %v1172_v51 }
 0xa7b   : > { %v1402_v34 = vpop.xlane.xlu1 %1401 }
 0xa7c   : > { %3580 = vrsqrt.f32 %v1174_v33  ;;  %v1406_v35 = vmul.f32 0.03125, %v1402_v34  ;;  %v3974_v34 = vld [vmem:[%s3747_s26 + $0x8] ss:$0 sm:$0xff] }
 0xa7e   : > { %v1408_v36 = vadd.f32 1e-06, %v1406_v35 }
 0xa7f   : > { %v1405_v37 = vpop.xlane.xlu0 %1404 }
 0xa80   : > { %3582 = vrsqrt.f32 %v1408_v36  ;;  %v1407_v38 = vmul.f32 0.03125, %v1405_v37 }
 0xa82   : > { %v1409_v39 = vadd.f32 1e-06, %v1407_v38 }
 0xa84   : > { %3584 = vrsqrt.f32 %v1409_v39 }
 0xa85   : > { %v3579_v40 = vpop.eup %3578 }
 0xa86   : > { %v1177_v41 = vmul.f32 %v3579_v40, %v1161_v16  ;;  %v440_v40 = vld [vmem:[%s4248_s1] sm:$0xff] }
 0xa87   : > { %vm442_vm8 = vcmp.gt.f32.partialorder %v440_v40, 0.5 }
 0xa88   : > { %v1184_v45 = vmul.f32 %v3089_v42, %v1177_v41  ;;  %v441_v41 = vld [vmem:[%s4248_s1 + $0x8] sm:$0xff] }
 0xa89   : > { %v3581_v43 = vpop.eup %3580  ;;  %vm443_vm9 = vcmp.gt.f32.partialorder %v441_v41, 0.5 }
 0xa8a   : > { %v1178_v44 = vmul.f32 %v3581_v43, %v1162_v12  ;;  %v1191_v52 = vadd.f32 %v3090_v46, %v1184_v45  ;;  %v3091_v12 = vld [vmem:[%s3747_s26 + $0x7] ss:$0 sm:$0xff] }
 0xa8c   : > { %v1185_v47 = vmul.f32 %v3089_v42, %v1178_v44  ;;  %v3988_v42 = vsel %vm442_vm8, 0.0, %v3645_v2 }
 0xa8d   : > { %v3583_v48 = vpop.eup %3582 }
 0xa8e   : > { %v1412_v50 = vmul.f32 %v3583_v48, %v1396_v18  ;;  %v1192_v54 = vadd.f32 %v3090_v46, %v1185_v47  ;;  %v3992_v46 = vsel %vm443_vm9, 0.0, %v3645_v2 }
 0xa90   : > { %v1205_v59 = vpack.c.bf16 %v1192_v54, %v1191_v52  ;;  %v1419_v49 = vmul.f32 %v3103_v57, %v1412_v50 }
 0xa91   : > { %v3585_v60 = vpop.eup %3584 }
 0xa92   : > { %v1413_v53 = vmul.f32 %v3585_v60, %v1397_v23  ;;  %3326 = vmatmul.mubr.msk.bf16.vlgmr.msra.gmra.mxu1 %vm513_vm2, %v1205_v59  ;;  %v1426_v5 = vadd.f32 %v3104_v63, %v1419_v49 }
 0xa93   : > { %3342 = vmatpush3.bf16.msra.mxu1 %v3538_v56  ;;  %3345 = vmatprep.mubr.msk.bf16.mxu1 %vm3643_vm0, %v3642_v0 }
 0xa94   : > { %3343 = vmatprep.subr.bf16.mxu1 %v3642_v0  ;;  %v1420_v3 = vmul.f32 %v3103_v57, %v1413_v53 }
 0xa96   : > { %v1427_v6 = vadd.f32 %v3104_v63, %v1420_v3 }
 0xa97   : > { %3344 = vmatpush3.bf16.msra.mxu1 %v3539_v11 }
 0xa98   : > { %v1436_v16 = vpack.c.bf16 %v1427_v6, %v1426_v5  ;;  %3349 = vmatprep.subr.bf16.mxu1 %v3642_v0 }
 0xa9a   : > { %3346 = vmatmul.mubr.msk.bf16.vlgmr.msra.gmra.mxu1 %vm513_vm2, %v1436_v16 }
 0xa9b   : > { %3351 = vmatprep.mubr.msk.bf16.mxu1 %vm3643_vm0, %v3642_v0 }
 0xb52   : > { %v1260_v13 = vpop.f32.mrf.mxu1 }
 0xb53   : > { %v1261_v15 = vadd.f32 %v3091_v12, %v1260_v13 }
 0xb54   : > { %v3327_v14 = vpop.f32.mrf.mxu1 }
 0xb55   : > { %v1267_v21 = vmax.f32 %v1261_v15, 0.0 }
 0xb56   : > { %v1263_v17 = vpop.f32.mrf.mxu1 }
 0xb57   : > { %v1264_v18 = vadd.f32 %v3091_v12, %v1263_v17 }
 0xb58   : > { %v3328_v19 = vpop.f32.mrf.mxu1 }
 0xb59   : > { %v1268_v22 = vmax.f32 %v1264_v18, 0.0 }
 0xb5a   : > { %v1491_v23 = vpop.f32.mrf.mxu1 }
 0xb5b   : > { %v1269_v55 = vpack.c.bf16 %v1268_v22, %v1267_v21  ;;  %v1492_v24 = vadd.f32 %v3105_v20, %v1491_v23 }
 0xb5c   : > { %v3347_v25 = vpop.f32.mrf.mxu1 }
 0xb5d   : > { %v3950_v26 = vpack.c.bf16 %v1492_v24, %v1492_v24  ;;  %3338 = vmatmul.mubr.msk.bf16.vlgmr.msra.gmra.mxu0 %vm1299_vm7, %v1269_v55 }
 0xb5e   : > { %v1494_v27 = vpop.f32.mrf.mxu1  ;;  %3357 = vmatprep.mubr.msk.bf16.mxu0 %vm3643_vm0, %v3642_v0 }
 0xb5f   : > { %v1495_v28 = vadd.f32 %v3105_v20, %v1494_v27  ;;  %1502 = vrot.lane.b32.xlu1 %v3950_v26, %s3644_s11 }
 0xb60   : > { %v3348_v29 = vpop.f32.mrf.mxu1 }
 0xb61   : > { %v3957_v30 = vpack.c.bf16 %v1495_v28, %v1495_v28 }
 0xb63   : > { %1551 = vrot.lane.b32.xlu0 %v3957_v30, %s3644_s11 }
 0xbd1   : > { %v1503_v31 = vpop.permute.xlu1 %1502 }
 0xbd2   : > { %v1508_v32 = vsel %vm459_vm1, %v1503_v31, 0 }
 0xbd3   : > { %3350 = vmatpush3.bf16.xpose.msra.mxu1 %v1508_v32 }
 0xbd4   : > { %3361 = vmatprep.subr.bf16.mxu1 %v3642_v0 }
 0xbd5   : > { %v1552_v51 = vpop.permute.xlu0 %1551 }
 0xbd6   : > { %v1557_v33 = vsel %vm459_vm1, %v1552_v51, 0 }
 0xbd7   : > { %3356 = vmatpush3.bf16.xpose.msra.mxu0 %v1557_v33 }
 0xbd8   : > { %3367 = vmatprep.subr.bf16.mxu0 %v3642_v0 }
 0xbda   : > { %3352 = vmatmul.mubr.msk.bf16.vlgmr.msra.gmra.mxu1 %vm459_vm1, %v3950_v26 }
 0xbdb   : > { %3363 = vmatprep.mubr.msk.bf16.mxu1 %vm3643_vm0, %v3642_v0 }
 0xbde   : > { %3358 = vmatmul.mubr.msk.bf16.vlgmr.msra.gmra.mxu0 %vm459_vm1, %v3957_v30 }
 0xbdf   : > { %3369 = vmatprep.mubr.msk.bf16.mxu0 %vm3643_vm0, %v3642_v0 }
 0xc1d   : > { %v1337_v35 = vpop.f32.mrf.mxu0 }
 0xc1e   : > { %v3977_v36 = vadd.f32 %v3974_v34, %v1337_v35 }
 0xc1f   : > { %v3339_v37 = vpop.f32.mrf.mxu0 }
 0xc21   : > { %v3979_v38 = vpop.f32.mrf.mxu0 }
 0xc23   : > { %v3340_v39 = vpop.f32.mrf.mxu0 }
 0xc9a   : > { %v1544_v43 = vpop.f32.mrf.mxu1 }
 0xc9b   : > { %v1545_v44 = vadd.f32 %v1544_v43, %v3988_v42 }
 0xc9c   : > { %v3353_v45 = vpop.f32.mrf.mxu1 }
 0xc9d   : > { %v1599_v47 = vsel %vm738_vm5, %v1545_v44, -inf }
 0xc9e   : > { %v1593_v48 = vpop.f32.mrf.mxu0  ;;  %1600 = vmax.xlane.f32.xlu1 %v1599_v47  ;;  %v1547_v50 = vpop.f32.mrf.mxu1 }
 0xc9f   : > { %v1594_v52 = vadd.f32 %v1593_v48, %v3992_v46 }
 0xca0   : > { %v3354_v54 = vpop.f32.mrf.mxu1  ;;  %v3359_v56 = vpop.f32.mrf.mxu0 }
 0xca1   : > { %v1602_v57 = vsel %vm738_vm5, %v1594_v52, -inf }
 0xca2   : > { %1603 = vmax.xlane.f32.xlu0 %v1602_v57  ;;  %v1596_v59 = vpop.f32.mrf.mxu0 }
 0xca4   : > { %v3360_v60 = vpop.f32.mrf.mxu0 }
 0xcaf   : > { %1623 = vrot.lane.b32.xlu1 %v3950_v26, %s3646_s16 }
 0xd27   : > { %v1601_v53 = vpop.xlane.xlu1 %1600 }
 0xd28   : > { %v1605_v2 = vsub.f32 %v1545_v44, %v1601_v53 }
 0xd2a   : > { %v1607_v49 = vmul.f32 1.442695, %v1605_v2 }
 0xd2b   : > { %v1604_v11 = vpop.xlane.xlu0 %1603  ;;  %v1624_v63 = vpop.permute.xlu1 %1623 }
 0xd2c   : > { %3586 = vpow2.f32 %v1607_v49  ;;  %v1606_v3 = vsub.f32 %v1594_v52, %v1604_v11  ;;  %v1629_v5 = vsel %vm768_vm6, %v1624_v63, 0 }
 0xd2d   : > { %3362 = vmatpush3.bf16.msra.mxu1 %v1629_v5 }
 0xd2e   : > { %v1609_v6 = vmul.f32 1.442695, %v1606_v3  ;;  %3373 = vmatprep.subr.bf16.mxu1 %v3642_v0 }
 0xd30   : > { %3588 = vpow2.f32 %v1609_v6  ;;  %v1341_v6 = vadd.f32 %v3974_v34, %v3979_v38 }
 0xd39   : > { %v3587_v16 = vpop.eup %3586 }
 0xd3a   : > { %v1611_v7 = vsel %vm738_vm5, %v3587_v16, 0.0 }
 0xd3b   : > { %1612 = vadd.xlane.f32.xlu1 %v1611_v7 }
 0xd3d   : > { %v3589_v9 = vpop.eup %3588 }
 0xd3e   : > { %v1614_v10 = vsel %vm738_vm5, %v3589_v9, 0.0 }
 0xd3f   : > { %1615 = vadd.xlane.f32.xlu0 %v1614_v10 }
 0xd4c   : > { %1721 = vrot.lane.b32.xlu1 %v3950_v26, %s3647_s17 }
 0xd50   : > { %1771 = vrot.lane.b32.xlu1 %v3957_v30, %s3647_s17 }
 0xd54   : > { %1719 = vrot.lane.b32.xlu1 %v3950_v26, %s3648_s20 }
 0xd55   : > { %1671 = vrot.lane.b32.xlu0 %v3957_v30, %s3646_s16  ;;  %s432_s16 = scalar_lea.vmem %s4256_s9, %s3735_s19 }
 0xd59   : > { %1769 = vrot.lane.b32.xlu0 %v3957_v30, %s3648_s20 }
 0xdc4   : > { %v1613_v12 = vpop.xlane.xlu1 %1612 }
 0xdc5   : > { %3590 = vrcp.f32 %v1613_v12 }
 0xdc8   : > { %v1616_v13 = vpop.xlane.xlu0 %1615  ;;  %v1722_v18 = vpop.permute.xlu1 %1721 }
 0xdc9   : > { %3592 = vrcp.f32 %v1616_v13  ;;  %v1727_v22 = vsel %vm459_vm1, %v1722_v18, 0  ;;  %v3545_v18 = vld [vmem:[%s3727_s18 + $0x38] sm:$0xff]  }
 0xdcc   : > { %v1672_v14 = vpop.permute.xlu0 %1671  ;;  %v1772_v55 = vpop.permute.xlu1 %1771 }
 0xdcd   : > { %v1677_v15 = vsel %vm768_vm6, %v1672_v14, 0  ;;  %v1777_v25 = vsel %vm459_vm1, %v1772_v55, 0 }
 0xdce   : > { %3368 = vmatpush3.bf16.msra.mxu0 %v1677_v15 }
 0xdcf   : > { %3379 = vmatprep.subr.bf16.mxu0 %v3642_v0 }
 0xdd0   : > { %v1720_v27 = vpop.permute.xlu1 %1719  ;;  %v1770_v28 = vpop.permute.xlu0 %1769 }
 0xdd2   : > { %v3591_v17 = vpop.eup %3590 }
 0xdd3   : > { %v1619_v19 = vmul.f32 %v3591_v17, %v3587_v16  ;;  %v1345_v16 = vadd.f32 %v1341_v6, %v3896_v61  ;;  %v3544_v17 = vld [vmem:[%s3727_s18 + $0x40] sm:$0xff]  }
 0xdd5   : > { %v1621_v20 = vpack.c.bf16 %v1619_v19, %v1619_v19  ;;  %v1349_v7 = vsel %vm513_vm2, %v1345_v16, 0.0 }
 0xdd6   : > { %v3593_v21 = vpop.eup %3592 }
 0xdd7   : > { %3364 = vmatmul.mubr.msk.bf16.vlgmr.msra.gmra.mxu1 %vm738_vm5, %v1621_v20  ;;  %v1620_v23 = vmul.f32 %v3593_v21, %v3589_v9 }
 0xdd8   : > { %3374 = vmatpush3.bf16.xpose.msra.mxu1 %v1727_v22  ;;  %3375 = vmatprep.mubr.msk.bf16.mxu1 %vm3643_vm0, %v3642_v0 }
 0xdd9   : > { %v1622_v24 = vpack.c.bf16 %v1620_v23, %v1620_v23  ;;  %3385 = vmatprep.subr.bf16.mxu1 %v3642_v0 }
 0xddb   : > { %3370 = vmatmul.mubr.msk.bf16.vlgmr.msra.gmra.mxu0 %vm738_vm5, %v1622_v24 }
 0xddc   : > { %3380 = vmatpush3.bf16.xpose.msra.mxu0 %v1777_v25  ;;  %3381 = vmatprep.mubr.msk.bf16.mxu0 %vm3643_vm0, %v3642_v0 }
 0xddd   : > { %3391 = vmatprep.subr.bf16.mxu0 %v3642_v0 }
 0xddf   : > { %3376 = vmatmul.mubr.msk.bf16.vlgmr.msra.gmra.mxu1 %vm459_vm1, %v1720_v27 }
 0xde0   : > { %3387 = vmatprep.mubr.msk.bf16.mxu1 %vm3643_vm0, %v3642_v0 }
 0xde3   : > { %3382 = vmatmul.mubr.msk.bf16.vlgmr.msra.gmra.mxu0 %vm459_vm1, %v1770_v28  ;;  %v1344_v28 = vadd.f32 %v3977_v36, %v3887_v58 }
 0xde4   : > { %3393 = vmatprep.mubr.msk.bf16.mxu0 %vm3643_vm0, %v3642_v0 }
 0xe97   : > { %v4031_v29 = vpop.f32.mrf.mxu1 }
 0xe99   : > { %v3365_v31 = vpop.f32.mrf.mxu1 }
 0xe9a   : > { %v1346_v31 = vsel %vm513_vm2, %v1344_v28, 0.0 }
 0xe9b   : > { %v1668_v32 = vpop.f32.mrf.mxu1  ;;  %v4033_v51 = vpop.f32.mrf.mxu0 }
 0xe9d   : > { %v3366_v33 = vpop.f32.mrf.mxu1  ;;  %v3371_v35 = vpop.f32.mrf.mxu0 }
 0xe9f   : > { %v1716_v37 = vpop.f32.mrf.mxu0  ;;  %v1763_v39 = vpop.f32.mrf.mxu1 }
 0xea0   : > { %v1764_v40 = vadd.f32 %v1763_v39, %v3988_v42 }
 0xea1   : > { %v3372_v41 = vpop.f32.mrf.mxu0  ;;  %v3377_v43 = vpop.f32.mrf.mxu1 }
 0xea2   : > { %v1819_v44 = vsel %vm738_vm5, %v1764_v40, -inf  ;;  %v3117_v43 = vld [vmem:[%s3747_s26 + $0xe] ss:$0 sm:$0xff] }
 0xea3   : > { %v1813_v45 = vpop.f32.mrf.mxu0  ;;  %1820 = vmax.xlane.f32.xlu1 %v1819_v44  ;;  %v1766_v47 = vpop.f32.mrf.mxu1 }
 0xea4   : > { %v1814_v48 = vadd.f32 %v1813_v45, %v3992_v46 }
 0xea5   : > { %v3378_v50 = vpop.f32.mrf.mxu1  ;;  %v3383_v52 = vpop.f32.mrf.mxu0 }
 0xea6   : > { %v1822_v54 = vsel %vm738_vm5, %v1814_v48, -inf }
 0xea7   : > { %1823 = vmax.xlane.f32.xlu0 %v1822_v54  ;;  %v1816_v56 = vpop.f32.mrf.mxu0 }
 0xea9   : > { %v3384_v57 = vpop.f32.mrf.mxu0 }
 0xeb4   : > { %1843 = vrot.lane.b32.xlu1 %v3950_v26, %s3649_s21 }
 0xf2c   : > { %v1821_v42 = vpop.xlane.xlu1 %1820 }
 0xf2d   : > { %v1825_v59 = vsub.f32 %v1764_v40, %v1821_v42 }
 0xf2f   : > { %v1827_v60 = vmul.f32 1.442695, %v1825_v59 }
 0xf30   : > { %v1824_v53 = vpop.xlane.xlu0 %1823  ;;  %v1844_v2 = vpop.permute.xlu1 %1843 }
 0xf31   : > { %3594 = vpow2.f32 %v1827_v60  ;;  %v1826_v49 = vsub.f32 %v1814_v48, %v1824_v53  ;;  %v1849_v11 = vsel %vm768_vm6, %v1844_v2, 0 }
 0xf32   : > { %3386 = vmatpush3.bf16.msra.mxu1 %v1849_v11  ;;  %v3547_v11 = vld [vmem:[%s3920_s13 + $0x10] sm:$0xff]  }
 0xf33   : > { %v1829_v46 = vmul.f32 1.442695, %v1826_v49  ;;  %3397 = vmatprep.subr.bf16.mxu1 %v3642_v0  ;;  %v3546_v49 = vld [vmem:[%s3920_s13 + $0x18] sm:$0xff]  }
 0xf35   : > { %3596 = vpow2.f32 %v1829_v46 }
 0xf3e   : > { %v3595_v63 = vpop.eup %3594 }
 0xf3f   : > { %v1831_v3 = vsel %vm738_vm5, %v3595_v63, 0.0 }
 0xf40   : > { %1832 = vadd.xlane.f32.xlu0 %v1831_v3 }
 0xf42   : > { %v3597_v5 = vpop.eup %3596 }
 0xf43   : > { %v1834_v26 = vsel %vm738_vm5, %v3597_v5, 0.0 }
 0xf44   : > { %1835 = vadd.xlane.f32.xlu0 %v1834_v26 }
 0xf5a   : > { %1891 = vrot.lane.b32.xlu0 %v3957_v30, %s3649_s21 }
 0xf79   : > { %1350 = vadd.xlane.f32.xlu0 %v1349_v7 }
 0xfc9   : > { %v1833_v9 = vpop.xlane.xlu0 %1832 }
 0xfca   : > { %3598 = vrcp.f32 %v1833_v9 }
 0xfcd   : > { %v1836_v10 = vpop.xlane.xlu0 %1835 }
 0xfce   : > { %3600 = vrcp.f32 %v1836_v10 }
 0xfd1   : > { %v1892_v12 = vpop.permute.xlu0 %1891 }
 0xfd2   : > { %v1897_v13 = vsel %vm768_vm6, %v1892_v12, 0 }
 0xfd3   : > { %3392 = vmatpush3.bf16.msra.mxu0 %v1897_v13 }
 0xfd4   : > { %3405 = vmatprep.subr.bf16.mxu0 %v3642_v0 }
 0xfd7   : > { %v3599_v30 = vpop.eup %3598 }
 0xfd8   : > { %v1839_v14 = vmul.f32 %v3599_v30, %v3595_v63 }
 0xfda   : > { %v1841_v34 = vpack.c.bf16 %v1839_v14, %v1839_v14 }
 0xfdb   : > { %v3601_v38 = vpop.eup %3600 }
 0xfdc   : > { %3388 = vmatmul.mubr.msk.bf16.vlgmr.msra.gmra.mxu1 %vm738_vm5, %v1841_v34  ;;  %v1840_v61 = vmul.f32 %v3601_v38, %v3597_v5 }
 0xfdd   : > { %3401 = vmatprep.mubr.msk.bf16.mxu1 %vm3643_vm0, %v3642_v0  ;;  %3398 = vmatpush3.bf16.msra.mxu1 %v3544_v17 }
 0xfde   : > { %v1842_v15 = vpack.c.bf16 %v1840_v61, %v1840_v61  ;;  %3399 = vmatprep.subr.bf16.mxu1 %v3642_v0 }
 0xfe0   : > { %3394 = vmatmul.mubr.msk.bf16.vlgmr.msra.gmra.mxu0 %vm738_vm5, %v1842_v15  ;;  %v3101_v15 = vld [vmem:[%s3747_s26 + $0x9] ss:$0 sm:$0xff] }
 0xfe1   : > { %3409 = vmatprep.mubr.msk.bf16.mxu0 %vm3643_vm0, %v3642_v0  ;;  %3400 = vmatpush3.bf16.msra.mxu1 %v3545_v18 }
 0xfe2   : > { %3413 = vmatprep.subr.bf16.mxu1 %v3642_v0 }
0x1002   : > { %v1351_v36 = vpop.xlane.xlu0 %1350 }
0x1003   : > { %v1353_v45 = vmul.f32 0.03125, %v1351_v36 }
0x1005   : > { %v1355_v52 = vsub.f32 %v1345_v16, %v1353_v45 }
0x1007   : > { %v1357_v53 = vmul.f32 %v1355_v52, %v1355_v52 }
0x1009   : > { %v1361_v2 = vsel %vm513_vm2, %v1357_v53, 0.0 }
0x109c   : > { %v1885_v19 = vpop.f32.mrf.mxu1 }
0x109e   : > { %v3389_v20 = vpop.f32.mrf.mxu1 }
0x109f   : > { %v3102_v20 = vld [vmem:[%s3747_s26 + $0xa] ss:$0 sm:$0xff] }
0x10a0   : > { %v1888_v21 = vpop.f32.mrf.mxu1  ;;  %v1933_v22 = vpop.f32.mrf.mxu0 }
0x10a1   : > { %v3521_v23 = vpack.i.bf16 %v1933_v22, %v1885_v19 }
0x10a2   : > { %v3390_v55 = vpop.f32.mrf.mxu1  ;;  %v3395_v24 = vpop.f32.mrf.mxu0 }
0x10a3   : > { %3522 = vrot.lane.b32.xlu1 %v3521_v23, %s3650_s22  ;;  %v3548_v24 = vld [vmem:[%s3727_s18 + $0x50] sm:$0xff]  }
0x10a4   : > { %v1936_v25 = vpop.f32.mrf.mxu0  ;;  %3406 = vmatpush3.bf16.msra.mxu0 %v3548_v24 }
0x10a5   : > { %v3549_v25 = vld [vmem:[%s3727_s18 + $0x48] sm:$0xff]   ;;  %3407 = vmatprep.subr.bf16.mxu0 %v3642_v0 }
0x10a6   : > { %v3396_v27 = vpop.f32.mrf.mxu0 }
0x10a8   : > { %3408 = vmatpush3.bf16.msra.mxu0 %v3549_v25 }
0x10a9   : > { %3421 = vmatprep.subr.bf16.mxu0 %v3642_v0 }
0x10c7   : > { %1347 = vadd.xlane.f32.xlu1 %v1346_v31 }
0x1115   : > { %v3523_v32 = vpop.permute.xlu1 %3522 }
0x1116   : > { %v3525_v33 = vunpack.i.h.bf16 %v3523_v32  ;;  %v3524_v35 = vunpack.i.l.bf16 %v3523_v32 }
0x1118   : > { %v1948_v37 = vsel %vm459_vm1, %v4033_v51, %v3525_v33  ;;  %v1947_v39 = vsel %vm459_vm1, %v4031_v29, %v3524_v35 }
0x1119   : > { %v1949_v40 = vpack.c.bf16 %v1948_v37, %v1947_v39 }
0x111b   : > { %3402 = vmatmul.mubr.msk.bf16.vlgmr.msra.gmra.mxu1 %vm513_vm2, %v1949_v40  ;;  %v3121_v40 = vld [vmem:[%s3747_s26 + $0xf] ss:$0 sm:$0xff] }
0x111c   : > { %3417 = vmatprep.mubr.msk.bf16.mxu1 %vm3643_vm0, %v3642_v0  ;;  %3414 = vmatpush3.bf16.msra.mxu1 %v3546_v49  ;;  %v3123_v49 = vld [vmem:[%s3747_s26 + $0x11] ss:$0 sm:$0xff] }
0x111d   : > { %3415 = vmatprep.subr.bf16.mxu1 %v3642_v0 }
0x1120   : > { %3416 = vmatpush3.bf16.msra.mxu1 %v3547_v11 }
0x1121   : > { %3427 = vmatprep.subr.bf16.mxu1 %v3642_v0 }
0x1150   : > { %v1348_v41 = vpop.xlane.xlu1 %1347 }
0x1151   : > { %v1352_v58 = vmul.f32 0.03125, %v1348_v41 }
0x1153   : > { %v1354_v47 = vsub.f32 %v1344_v28, %v1352_v58 }
0x1155   : > { %v1356_v57 = vmul.f32 %v1354_v47, %v1354_v47 }
0x1157   : > { %v1358_v60 = vsel %vm513_vm2, %v1356_v57, 0.0 }
0x11db   : > { %v2003_v44 = vpop.f32.mrf.mxu1 }
0x11dc   : > { %v2004_v48 = vadd.f32 %v3117_v43, %v2003_v44 }
0x11dd   : > { %v3403_v50 = vpop.f32.mrf.mxu1 }
0x11de   : > { %v4076_v51 = vadd.f32 %v2004_v48, %v3898_v62  ;;  %v3127_v50 = vld [vmem:[%s3747_s26 + $0x12] ss:$0 sm:$0xff] }
0x11df   : > { %v2006_v29 = vpop.f32.mrf.mxu1 }
0x11e0   : > { %v2007_v54 = vadd.f32 %v3117_v43, %v2006_v29  ;;  %v2012_v56 = vsel %vm513_vm2, %v4076_v51, 0.0  ;;  %v3122_v43 = vld [vmem:[%s3747_s26 + $0x10] ss:$0 sm:$0xff] }
0x11e1   : > { %2013 = vadd.xlane.f32.xlu0 %v2012_v56  ;;  %v3404_v42 = vpop.f32.mrf.mxu1 }
0x11e2   : > { %v4081_v59 = vadd.f32 %v2007_v54, %v3904_v1 }
0x11e4   : > { %v2015_v62 = vsel %vm513_vm2, %v4081_v59, 0.0 }
0x11e5   : > { %1359 = vadd.xlane.f32.xlu0 %v1358_v60  ;;  %2016 = vadd.xlane.f32.xlu1 %v2015_v62 }
0x11e9   : > { %1362 = vadd.xlane.f32.xlu1 %v1361_v2 }
0x126a   : > { %v2014_v1 = vpop.xlane.xlu0 %2013 }
0x126b   : > { %v2018_v46 = vmul.f32 0.03125, %v2014_v1 }
0x126d   : > { %v2020_v63 = vsub.f32 %v4076_v51, %v2018_v46 }
0x126e   : > { %v1360_v3 = vpop.xlane.xlu0 %1359  ;;  %v2017_v5 = vpop.xlane.xlu1 %2016 }
0x126f   : > { %v1364_v26 = vmul.f32 0.03125, %v1360_v3  ;;  %v2019_v6 = vmul.f32 0.03125, %v2017_v5  ;;  %v2022_v16 = vmul.f32 %v2020_v63, %v2020_v63 }
0x1271   : > { %v1366_v7 = vadd.f32 1e-06, %v1364_v26  ;;  %v2021_v9 = vsub.f32 %v4081_v59, %v2019_v6  ;;  %v2024_v10 = vsel %vm513_vm2, %v2022_v16, 0.0 }
0x1272   : > { %2025 = vadd.xlane.f32.xlu0 %v2024_v10  ;;  %v1363_v12 = vpop.xlane.xlu1 %1362 }
0x1273   : > { %3602 = vrsqrt.f32 %v1366_v7  ;;  %v1365_v13 = vmul.f32 0.03125, %v1363_v12  ;;  %v2023_v30 = vmul.f32 %v2021_v9, %v2021_v9 }
0x1275   : > { %v1367_v14 = vadd.f32 1e-06, %v1365_v13  ;;  %v2027_v34 = vsel %vm513_vm2, %v2023_v30, 0.0 }
0x1276   : > { %2028 = vadd.xlane.f32.xlu1 %v2027_v34 }
0x1277   : > { %3604 = vrsqrt.f32 %v1367_v14 }
0x1280   : > { %v3603_v38 = vpop.eup %3602 }
0x1281   : > { %v1370_v61 = vmul.f32 %v3603_v38, %v1354_v47 }
0x1283   : > { %v1377_v19 = vmul.f32 %v3101_v15, %v1370_v61 }
0x1284   : > { %v3605_v17 = vpop.eup %3604 }
0x1285   : > { %v1371_v18 = vmul.f32 %v3605_v17, %v1355_v52  ;;  %v1384_v22 = vadd.f32 %v3102_v20, %v1377_v19 }
0x1287   : > { %v1378_v21 = vmul.f32 %v3101_v15, %v1371_v18 }
0x1289   : > { %v1385_v23 = vadd.f32 %v3102_v20, %v1378_v21 }
0x128b   : > { %v2122_v55 = vpack.c.bf16 %v1385_v23, %v1384_v22 }
0x128d   : > { %3418 = vmatmul.mubr.msk.bf16.vlgmr.msra.gmra.mxu1 %vm513_vm2, %v2122_v55 }
0x128e   : > { %3429 = vmatprep.mubr.msk.bf16.mxu1 %vm3643_vm0, %v3642_v0 }
0x12fb   : > { %v2026_v27 = vpop.xlane.xlu0 %2025 }
0x12fc   : > { %v2030_v28 = vmul.f32 0.03125, %v2026_v27 }
0x12fe   : > { %v2032_v31 = vadd.f32 1e-06, %v2030_v28 }
0x12ff   : > { %v2029_v32 = vpop.xlane.xlu1 %2028 }
0x1300   : > { %3606 = vrsqrt.f32 %v2032_v31  ;;  %v2031_v33 = vmul.f32 0.03125, %v2029_v32 }
0x1302   : > { %v2033_v35 = vadd.f32 1e-06, %v2031_v33 }
0x1304   : > { %3608 = vrsqrt.f32 %v2033_v35 }
0x130d   : > { %v3607_v37 = vpop.eup %3606 }
0x130e   : > { %v2036_v39 = vmul.f32 %v3607_v37, %v2020_v63 }
0x1310   : > { %v2043_v36 = vmul.f32 %v3121_v40, %v2036_v39 }
0x1311   : > { %v3609_v41 = vpop.eup %3608 }
0x1312   : > { %v2037_v58 = vmul.f32 %v3609_v41, %v2021_v9  ;;  %v2050_v45 = vadd.f32 %v3122_v43, %v2043_v36 }
0x1314   : > { %v2044_v44 = vmul.f32 %v3121_v40, %v2037_v58 }
0x1316   : > { %v2051_v47 = vadd.f32 %v3122_v43, %v2044_v44 }
0x1318   : > { %v2056_v48 = vpack.c.bf16 %v2051_v47, %v2050_v45 }
0x131a   : > { %3410 = vmatmul.mubr.msk.bf16.vlgmr.msra.gmra.mxu0 %vm513_vm2, %v2056_v48 }
0x131b   : > { %3423 = vmatprep.mubr.msk.bf16.mxu0 %vm3643_vm0, %v3642_v0 }
0x134d   : > { %v2177_v29 = vpop.f32.mrf.mxu1 }
0x134e   : > { %v2178_v52 = vadd.f32 %v3127_v50, %v2177_v29 }
0x134f   : > { %v3419_v54 = vpop.f32.mrf.mxu1 }
0x1350   : > { %v4110_v56 = vpack.c.bf16 %v2178_v52, %v2178_v52 }
0x1351   : > { %v2180_v57 = vpop.f32.mrf.mxu1 }
0x1352   : > { %v2181_v42 = vadd.f32 %v3127_v50, %v2180_v57  ;;  %v2197_v60 = vsel %vm459_vm1, %v4110_v56, 0 }
0x1353   : > { %v3420_v62 = vpop.f32.mrf.mxu1  ;;  %3422 = vmatpush3.bf16.xpose.msra.mxu0 %v2197_v60 }
0x1354   : > { %v4114_v53 = vpack.c.bf16 %v2181_v42, %v2181_v42  ;;  %3433 = vmatprep.subr.bf16.mxu0 %v3642_v0 }
0x1356   : > { %v2243_v2 = vsel %vm459_vm1, %v4114_v53, 0 }
0x1357   : > { %3428 = vmatpush3.bf16.xpose.msra.mxu1 %v2243_v2 }
0x1358   : > { %3439 = vmatprep.subr.bf16.mxu1 %v3642_v0 }
0x13da   : > { %v2111_v11 = vpop.f32.mrf.mxu0 }
0x13db   : > { %v2112_v1 = vadd.f32 %v3123_v49, %v2111_v11 }
0x13dc   : > { %v3411_v46 = vpop.f32.mrf.mxu0 }
0x13dd   : > { %v2189_v63 = vpack.c.bf16 %v2112_v1, %v2112_v1 }
0x13de   : > { %v2114_v3 = vpop.f32.mrf.mxu0 }
0x13df   : > { %v2115_v5 = vadd.f32 %v3123_v49, %v2114_v3  ;;  %3424 = vmatmul.mubr.msk.bf16.vlgmr.msra.gmra.mxu0 %vm459_vm1, %v2189_v63 }
0x13e0   : > { %v3412_v26 = vpop.f32.mrf.mxu0  ;;  %3435 = vmatprep.mubr.msk.bf16.mxu0 %vm3643_vm0, %v3642_v0 }
0x13e1   : > { %v2190_v6 = vpack.c.bf16 %v2115_v5, %v2115_v5 }
0x13e3   : > { %3430 = vmatmul.mubr.msk.bf16.vlgmr.msra.gmra.mxu1 %vm459_vm1, %v2190_v6 }
0x13e4   : > { %3441 = vmatprep.mubr.msk.bf16.mxu1 %vm3643_vm0, %v3642_v0 }
0x149f   : > { %v2233_v16 = vpop.f32.mrf.mxu0 }
0x14a0   : > { %v2234_v7 = vadd.f32 %v2233_v16, %v3806_v4 }
0x14a1   : > { %v3425_v9 = vpop.f32.mrf.mxu0 }
0x14a2   : > { %v2285_v10 = vsel %vm738_vm5, %v2234_v7, -inf }
0x14a3   : > { %2286 = vmax.xlane.f32.xlu0 %v2285_v10  ;;  %v2236_v12 = vpop.f32.mrf.mxu0  ;;  %v2279_v13 = vpop.f32.mrf.mxu1 }
0x14a4   : > { %v2280_v30 = vadd.f32 %v2279_v13, %v3810_v8 }
0x14a5   : > { %v3426_v14 = vpop.f32.mrf.mxu0  ;;  %v3431_v34 = vpop.f32.mrf.mxu1 }
0x14a6   : > { %v2288_v38 = vsel %vm738_vm5, %v2280_v30, -inf }
0x14a7   : > { %2289 = vmax.xlane.f32.xlu1 %v2288_v38  ;;  %v2282_v61 = vpop.f32.mrf.mxu1 }
0x14a9   : > { %v3432_v15 = vpop.f32.mrf.mxu1 }
0x14b8   : > { %2359 = vrot.lane.b32.xlu1 %v4114_v53, %s3644_s11 }
0x14bc   : > { %2410 = vrot.lane.b32.xlu1 %v4110_v56, %s3648_s20 }
0x152c   : > { %v2287_v17 = vpop.xlane.xlu0 %2286 }
0x152d   : > { %v2291_v18 = vsub.f32 %v2234_v7, %v2287_v17 }
0x152f   : > { %v2293_v19 = vmul.f32 1.442695, %v2291_v18 }
0x1530   : > { %v2290_v20 = vpop.xlane.xlu1 %2289 }
0x1531   : > { %3610 = vpow2.f32 %v2293_v19  ;;  %v2292_v21 = vsub.f32 %v2280_v30, %v2290_v20 }
0x1533   : > { %v2295_v22 = vmul.f32 1.442695, %v2292_v21 }
0x1534   : > { %v2360_v23 = vpop.permute.xlu1 %2359 }
0x1535   : > { %3612 = vpow2.f32 %v2295_v22  ;;  %v2365_v55 = vsel %vm768_vm6, %v2360_v23, 0 }
0x1536   : > { %3440 = vmatpush3.bf16.msra.mxu1 %v2365_v55 }
0x1537   : > { %3451 = vmatprep.subr.bf16.mxu1 %v3642_v0 }
0x1538   : > { %v2411_v31 = vpop.permute.xlu1 %2410 }
0x1539   : > { %v2416_v36 = vsel %vm459_vm1, %v2411_v31, 0 }
0x153e   : > { %v3611_v24 = vpop.eup %3610 }
0x153f   : > { %v2297_v25 = vsel %vm738_vm5, %v3611_v24, 0.0 }
0x1540   : > { %2298 = vadd.xlane.f32.xlu0 %v2297_v25  ;;  %v3550_v25 = vld [vmem:[%s3727_s18 + $0x60] sm:$0xff]  }
0x1542   : > { %v3613_v27 = vpop.eup %3612 }
0x1543   : > { %v2300_v28 = vsel %vm738_vm5, %v3613_v27, 0.0 }
0x1544   : > { %2301 = vadd.xlane.f32.xlu1 %v2300_v28 }
0x1555   : > { %2461 = vrot.lane.b32.xlu1 %v4114_v53, %s3648_s20 }
0x1556   : > { %2310 = vrot.lane.b32.xlu0 %v4110_v56, %s3644_s11 }
0x1559   : > { %2459 = vrot.lane.b32.xlu1 %v2190_v6, %s3648_s20 }
0x155a   : > { %2408 = vrot.lane.b32.xlu0 %v2189_v63, %s3648_s20 }
0x15c9   : > { %v2299_v32 = vpop.xlane.xlu0 %2298 }
0x15ca   : > { %3614 = vrcp.f32 %v2299_v32 }
0x15cd   : > { %v2311_v33 = vpop.permute.xlu0 %2310  ;;  %v2302_v35 = vpop.xlane.xlu1 %2301 }
0x15ce   : > { %v2316_v37 = vsel %vm768_vm6, %v2311_v33, 0  ;;  %3616 = vrcp.f32 %v2302_v35 }
0x15cf   : > { %3434 = vmatpush3.bf16.msra.mxu0 %v2316_v37 }
0x15d0   : > { %3445 = vmatprep.subr.bf16.mxu0 %v3642_v0 }
0x15d1   : > { %v2462_v44 = vpop.permute.xlu1 %2461  ;;  %v2409_v48 = vpop.permute.xlu0 %2408 }
0x15d2   : > { %v2467_v47 = vsel %vm459_vm1, %v2462_v44, 0 }
0x15d5   : > { %v2460_v50 = vpop.permute.xlu1 %2459 }
0x15d7   : > { %v3615_v39 = vpop.eup %3614 }
0x15d8   : > { %v2305_v40 = vmul.f32 %v3615_v39, %v3611_v24 }
0x15da   : > { %v2307_v41 = vpack.c.bf16 %v2305_v40, %v2305_v40 }
0x15db   : > { %v3617_v58 = vpop.eup %3616 }
0x15dc   : > { %3436 = vmatmul.mubr.msk.bf16.vlgmr.msra.gmra.mxu0 %vm738_vm5, %v2307_v41  ;;  %v2306_v43 = vmul.f32 %v3617_v58, %v3613_v27  ;;  %v3551_v27 = vld [vmem:[%s3727_s18 + $0x58] sm:$0xff]  }
0x15dd   : > { %3446 = vmatpush3.bf16.xpose.msra.mxu0 %v2416_v36  ;;  %3447 = vmatprep.mubr.msk.bf16.mxu0 %vm3643_vm0, %v3642_v0 }
0x15de   : > { %v2308_v45 = vpack.c.bf16 %v2306_v43, %v2306_v43  ;;  %3457 = vmatprep.subr.bf16.mxu0 %v3642_v0 }
0x15e0   : > { %3442 = vmatmul.mubr.msk.bf16.vlgmr.msra.gmra.mxu1 %vm738_vm5, %v2308_v45 }
0x15e1   : > { %3452 = vmatpush3.bf16.xpose.msra.mxu1 %v2467_v47  ;;  %3453 = vmatprep.mubr.msk.bf16.mxu1 %vm3643_vm0, %v3642_v0 }
0x15e2   : > { %3463 = vmatprep.subr.bf16.mxu1 %v3642_v0 }
0x15e4   : > { %3448 = vmatmul.mubr.msk.bf16.vlgmr.msra.gmra.mxu0 %vm459_vm1, %v2409_v48  ;;  %v3139_v48 = vld [vmem:[%s3747_s26 + $0x13] ss:$0 sm:$0xff] }
0x15e5   : > { %3459 = vmatprep.mubr.msk.bf16.mxu0 %vm3643_vm0, %v3642_v0 }
0x15e8   : > { %3454 = vmatmul.mubr.msk.bf16.vlgmr.msra.gmra.mxu1 %vm459_vm1, %v2460_v50 }
0x15e9   : > { %3465 = vmatprep.mubr.msk.bf16.mxu1 %vm3643_vm0, %v3642_v0 }
0x169c   : > { %v4163_v29 = vpop.f32.mrf.mxu0 }
0x169e   : > { %v3437_v52 = vpop.f32.mrf.mxu0 }
0x16a0   : > { %v2355_v54 = vpop.f32.mrf.mxu0  ;;  %v4165_v57 = vpop.f32.mrf.mxu1 }
0x16a2   : > { %v3438_v42 = vpop.f32.mrf.mxu0  ;;  %v3443_v60 = vpop.f32.mrf.mxu1 }
0x16a4   : > { %v2404_v62 = vpop.f32.mrf.mxu1  ;;  %v2452_v2 = vpop.f32.mrf.mxu0 }
0x16a5   : > { %v2453_v49 = vadd.f32 %v2452_v2, %v3806_v4 }
0x16a6   : > { %v3444_v11 = vpop.f32.mrf.mxu1  ;;  %v3449_v1 = vpop.f32.mrf.mxu0 }
0x16a7   : > { %v2509_v46 = vsel %vm738_vm5, %v2453_v49, -inf }
0x16a8   : > { %2510 = vmax.xlane.f32.xlu0 %v2509_v46  ;;  %v2455_v63 = vpop.f32.mrf.mxu0  ;;  %v2503_v3 = vpop.f32.mrf.mxu1 }
0x16a9   : > { %v2504_v5 = vadd.f32 %v2503_v3, %v3810_v8 }
0x16aa   : > { %v3450_v26 = vpop.f32.mrf.mxu0  ;;  %v3455_v6 = vpop.f32.mrf.mxu1 }
0x16ab   : > { %v2512_v16 = vsel %vm738_vm5, %v2504_v5, -inf }
0x16ac   : > { %2513 = vmax.xlane.f32.xlu1 %v2512_v16  ;;  %v2506_v7 = vpop.f32.mrf.mxu1  ;;  %v3552_v16 = vld [vmem:[%s3920_s13 + $0x28] sm:$0xff]  }
0x16ad   : > { %v3553_v7 = vld [vmem:[%s3920_s13 + $0x20] sm:$0xff]  }
0x16ae   : > { %v3456_v9 = vpop.f32.mrf.mxu1 }
0x16af   : > { %v3554_v9 = vld [vmem:[%s3727_s18 + $0x80] sm:$0xff]  }
0x16bd   : > { %2581 = vrot.lane.b32.xlu1 %v4114_v53, %s3647_s17 }
0x1731   : > { %v2511_v4 = vpop.xlane.xlu0 %2510 }
0x1732   : > { %v2515_v10 = vsub.f32 %v2453_v49, %v2511_v4 }
0x1734   : > { %v2517_v12 = vmul.f32 1.442695, %v2515_v10 }
0x1735   : > { %v2514_v13 = vpop.xlane.xlu1 %2513 }
0x1736   : > { %3618 = vpow2.f32 %v2517_v12  ;;  %v2516_v30 = vsub.f32 %v2504_v5, %v2514_v13 }
0x1738   : > { %v2519_v14 = vmul.f32 1.442695, %v2516_v30 }
0x1739   : > { %v2582_v34 = vpop.permute.xlu1 %2581 }
0x173a   : > { %3620 = vpow2.f32 %v2519_v14  ;;  %v2587_v8 = vsel %vm768_vm6, %v2582_v34, 0 }
0x173b   : > { %3464 = vmatpush3.bf16.msra.mxu1 %v2587_v8 }
0x173c   : > { %3477 = vmatprep.subr.bf16.mxu1 %v3642_v0 }
0x1743   : > { %v3619_v38 = vpop.eup %3618 }
0x1744   : > { %v2521_v61 = vsel %vm738_vm5, %v3619_v38, 0.0 }
0x1745   : > { %2522 = vadd.xlane.f32.xlu0 %v2521_v61 }
0x1747   : > { %v3621_v15 = vpop.eup %3620 }
0x1748   : > { %v2524_v53 = vsel %vm738_vm5, %v3621_v15, 0.0 }
0x1749   : > { %2525 = vadd.xlane.f32.xlu0 %v2524_v53 }
0x175f   : > { %2533 = vrot.lane.b32.xlu0 %v4110_v56, %s3647_s17 }
0x17ce   : > { %v2523_v17 = vpop.xlane.xlu0 %2522 }
0x17cf   : > { %3622 = vrcp.f32 %v2523_v17  ;;  %v3144_v17 = vld [vmem:[%s3747_s26 + $0x15] ss:$0 sm:$0xff] }
0x17d2   : > { %v2526_v18 = vpop.xlane.xlu0 %2525 }
0x17d3   : > { %3624 = vrcp.f32 %v2526_v18 }
0x17d6   : > { %v2534_v19 = vpop.permute.xlu0 %2533 }
0x17d7   : > { %v2539_v20 = vsel %vm768_vm6, %v2534_v19, 0 }
0x17d8   : > { %3458 = vmatpush3.bf16.msra.mxu0 %v2539_v20 }
0x17d9   : > { %3469 = vmatprep.subr.bf16.mxu0 %v3642_v0 }
0x17dc   : > { %v3623_v21 = vpop.eup %3622 }
0x17dd   : > { %v2529_v22 = vmul.f32 %v3623_v21, %v3619_v38  ;;  %v3143_v38 = vld [vmem:[%s3747_s26 + $0x14] ss:$0 sm:$0xff] }
0x17df   : > { %v2531_v23 = vpack.c.bf16 %v2529_v22, %v2529_v22  ;;  %v3555_v22 = vld [vmem:[%s3727_s18 + $0x78] sm:$0xff]  }
0x17e0   : > { %v3625_v55 = vpop.eup %3624 }
0x17e1   : > { %3460 = vmatmul.mubr.msk.bf16.vlgmr.msra.gmra.mxu0 %vm738_vm5, %v2531_v23  ;;  %v2530_v24 = vmul.f32 %v3625_v55, %v3621_v15  ;;  %v3556_v23 = vld [vmem:[%s3727_s18 + $0x70] sm:$0xff]   ;;  %v3557_v55 = vld [vmem:[%s3727_s18 + $0x68] sm:$0xff]  }
0x17e2   : > { %3473 = vmatprep.mubr.msk.bf16.mxu0 %vm3643_vm0, %v3642_v0  ;;  %3470 = vmatpush3.bf16.msra.mxu0 %v3550_v25 }
0x17e3   : > { %v2532_v56 = vpack.c.bf16 %v2530_v24, %v2530_v24  ;;  %3471 = vmatprep.subr.bf16.mxu0 %v3642_v0  ;;  %v3145_v24 = vld [vmem:[%s3747_s26 + $0x16] ss:$0 sm:$0xff] }
0x17e5   : > { %3466 = vmatmul.mubr.msk.bf16.vlgmr.msra.gmra.mxu1 %vm738_vm5, %v2532_v56 }
0x17e6   : > { %3481 = vmatprep.mubr.msk.bf16.mxu1 %vm3643_vm0, %v3642_v0  ;;  %3472 = vmatpush3.bf16.msra.mxu0 %v3551_v27 }
0x17e7   : > { %3485 = vmatprep.subr.bf16.mxu0 %v3642_v0  ;;  %3478 = vmatpush3.bf16.msra.mxu1 %v3552_v16 }
0x17e8   : > { %3479 = vmatprep.subr.bf16.mxu1 %v3642_v0 }
0x17eb   : > { %3480 = vmatpush3.bf16.msra.mxu1 %v3553_v7 }
0x18a1   : > { %v2575_v28 = vpop.f32.mrf.mxu0 }
0x18a3   : > { %v3461_v31 = vpop.f32.mrf.mxu0 }
0x18a5   : > { %v2578_v32 = vpop.f32.mrf.mxu0  ;;  %v2623_v33 = vpop.f32.mrf.mxu1 }
0x18a6   : > { %v3526_v35 = vpack.i.bf16 %v2623_v33, %v2575_v28 }
0x18a7   : > { %v3462_v37 = vpop.f32.mrf.mxu0  ;;  %v3467_v39 = vpop.f32.mrf.mxu1 }
0x18a8   : > { %3527 = vrot.lane.b32.xlu1 %v3526_v35, %s3650_s22  ;;  %v3149_v39 = vld [vmem:[%s3747_s26 + $0x17] ss:$0 sm:$0xff] }
0x18a9   : > { %v2626_v40 = vpop.f32.mrf.mxu1 }
0x18ab   : > { %v3468_v41 = vpop.f32.mrf.mxu1 }
0x191a   : > { %v3528_v58 = vpop.permute.xlu1 %3527 }
0x191b   : > { %v3530_v36 = vunpack.i.h.bf16 %v3528_v58  ;;  %v3529_v43 = vunpack.i.l.bf16 %v3528_v58 }
0x191d   : > { %v2638_v44 = vsel %vm459_vm1, %v4165_v57, %v3530_v36  ;;  %v2637_v45 = vsel %vm459_vm1, %v4163_v29, %v3529_v43 }
0x191e   : > { %v2639_v47 = vpack.c.bf16 %v2638_v44, %v2637_v45 }
0x1920   : > { %3474 = vmatmul.mubr.msk.bf16.vlgmr.msra.gmra.mxu0 %vm513_vm2, %v2639_v47 }
0x1921   : > { %3493 = vmatprep.mubr.msk.bf16.mxu0 %vm3643_vm0, %v3642_v0  ;;  %3486 = vmatpush3.bf16.msra.mxu0 %v3554_v9 }
0x1922   : > { %3487 = vmatprep.subr.bf16.mxu0 %v3642_v0 }
0x1925   : > { %3488 = vmatpush3.bf16.msra.mxu0 %v3555_v22 }
0x1926   : > { %3489 = vmatprep.subr.bf16.mxu0 %v3642_v0 }
0x1929   : > { %3490 = vmatpush3.bf16.msra.mxu0 %v3556_v23 }
0x192a   : > { %3491 = vmatprep.subr.bf16.mxu0 %v3642_v0 }
0x192d   : > { %3492 = vmatpush3.bf16.msra.mxu0 %v3557_v55 }
0x19e0   : > { %v2693_v50 = vpop.f32.mrf.mxu0 }
0x19e1   : > { %v2694_v52 = vadd.f32 %v3139_v48, %v2693_v50 }
0x19e2   : > { %v3475_v54 = vpop.f32.mrf.mxu0 }
0x19e3   : > { %v4201_v42 = vadd.f32 %v2694_v52, %v4076_v51 }
0x19e4   : > { %v2696_v60 = vpop.f32.mrf.mxu0 }
0x19e5   : > { %v2697_v62 = vadd.f32 %v3139_v48, %v2696_v60  ;;  %v2702_v57 = vsel %vm513_vm2, %v4201_v42, 0.0 }
0x19e6   : > { %2703 = vadd.xlane.f32.xlu1 %v2702_v57  ;;  %v3476_v29 = vpop.f32.mrf.mxu0 }
0x19e7   : > { %v4206_v2 = vadd.f32 %v2697_v62, %v4081_v59 }
0x19e9   : > { %v2705_v49 = vsel %vm513_vm2, %v4206_v2, 0.0 }
0x19ea   : > { %2706 = vadd.xlane.f32.xlu0 %v2705_v49 }
0x1a6f   : > { %v2704_v11 = vpop.xlane.xlu1 %2703 }
0x1a70   : > { %v2708_v1 = vmul.f32 0.03125, %v2704_v11 }
0x1a72   : > { %v2710_v51 = vsub.f32 %v4201_v42, %v2708_v1 }
0x1a73   : > { %v2707_v46 = vpop.xlane.xlu0 %2706 }
0x1a74   : > { %v2709_v63 = vmul.f32 0.03125, %v2707_v46  ;;  %v2712_v3 = vmul.f32 %v2710_v51, %v2710_v51 }
0x1a76   : > { %v2711_v5 = vsub.f32 %v4206_v2, %v2709_v63  ;;  %v2714_v26 = vsel %vm513_vm2, %v2712_v3, 0.0 }
0x1a77   : > { %2715 = vadd.xlane.f32.xlu0 %v2714_v26  ;;  %v3155_v26 = vld [vmem:[%s3747_s26 + $0x18] ss:$0 sm:$0xff] }
0x1a78   : > { %v2713_v59 = vmul.f32 %v2711_v5, %v2711_v5 }
0x1a7a   : > { %v2717_v6 = vsel %vm513_vm2, %v2713_v59, 0.0 }
0x1a7b   : > { %2718 = vadd.xlane.f32.xlu0 %v2717_v6  ;;  %v3156_v6 = vld [vmem:[%s3747_s26 + $0x19] ss:$0 sm:$0xff] }
0x1b00   : > { %v2716_v4 = vpop.xlane.xlu0 %2715 }
0x1b01   : > { %v2720_v10 = vmul.f32 0.03125, %v2716_v4 }
0x1b03   : > { %v2722_v12 = vadd.f32 1e-06, %v2720_v10 }
0x1b04   : > { %v2719_v13 = vpop.xlane.xlu0 %2718 }
0x1b05   : > { %3626 = vrsqrt.f32 %v2722_v12  ;;  %v2721_v30 = vmul.f32 0.03125, %v2719_v13 }
0x1b07   : > { %v2723_v14 = vadd.f32 1e-06, %v2721_v30 }
0x1b09   : > { %3628 = vrsqrt.f32 %v2723_v14 }
0x1b12   : > { %v3627_v34 = vpop.eup %3626 }
0x1b13   : > { %v2726_v8 = vmul.f32 %v3627_v34, %v2710_v51 }
0x1b15   : > { %v2733_v53 = vmul.f32 %v3143_v38, %v2726_v8 }
0x1b16   : > { %v3629_v61 = vpop.eup %3628 }
0x1b17   : > { %v2727_v15 = vmul.f32 %v3629_v61, %v2711_v5  ;;  %v2740_v19 = vadd.f32 %v3144_v17, %v2733_v53 }
0x1b19   : > { %v2734_v18 = vmul.f32 %v3143_v38, %v2727_v15 }
0x1b1b   : > { %v2741_v20 = vadd.f32 %v3144_v17, %v2734_v18 }
0x1b1d   : > { %v2754_v21 = vpack.c.bf16 %v2741_v20, %v2740_v19 }
0x1b1f   : > { %3482 = vmatmul.mubr.msk.bf16.vlgmr.msra.gmra.mxu1 %vm513_vm2, %v2754_v21 }
0x1bdf   : > { %v2809_v56 = vpop.f32.mrf.mxu1 }
0x1be0   : > { %v2810_v27 = vadd.f32 %v3145_v24, %v2809_v56 }
0x1be1   : > { %v3483_v25 = vpop.f32.mrf.mxu1 }
0x1be2   : > { %v2816_v33 = vmax.f32 %v2810_v27, 0.0 }
0x1be3   : > { %v2812_v28 = vpop.f32.mrf.mxu1 }
0x1be4   : > { %v2813_v31 = vadd.f32 %v3145_v24, %v2812_v28 }
0x1be5   : > { %v3484_v32 = vpop.f32.mrf.mxu1 }
0x1be6   : > { %v2817_v35 = vmax.f32 %v2813_v31, 0.0 }
0x1be8   : > { %v2818_v37 = vpack.c.bf16 %v2817_v35, %v2816_v33 }
0x1bea   : > { %3494 = vmatmul.mubr.msk.bf16.vlgmr.msra.gmra.mxu0 %vm1299_vm7, %v2818_v37 }
0x1caa   : > { %v2885_v40 = vpop.f32.mrf.mxu0 }
0x1cab   : > { %v2886_v41 = vadd.f32 %v3149_v39, %v2885_v40 }
0x1cac   : > { %v3495_v58 = vpop.f32.mrf.mxu0 }
0x1cad   : > { %v2892_v0 = vadd.f32 %v2886_v41, %v4201_v42 }
0x1cae   : > { %v2888_v36 = vpop.f32.mrf.mxu0 }
0x1caf   : > { %v2889_v43 = vadd.f32 %v3149_v39, %v2888_v36  ;;  %v2894_v44 = vsel %vm513_vm2, %v2892_v0, 0.0 }
0x1cb0   : > { %2895 = vadd.xlane.f32.xlu1 %v2894_v44  ;;  %v3496_v45 = vpop.f32.mrf.mxu0 }
0x1cb1   : > { %v2893_v47 = vadd.f32 %v2889_v43, %v4206_v2 }
0x1cb3   : > { %v2897_v48 = vsel %vm513_vm2, %v2893_v47, 0.0 }
0x1cb4   : > { %2898 = vadd.xlane.f32.xlu0 %v2897_v48 }
0x1d39   : > { %v2896_v50 = vpop.xlane.xlu1 %2895 }
0x1d3a   : > { %v2900_v52 = vmul.f32 0.03125, %v2896_v50 }
0x1d3c   : > { %v2902_v54 = vsub.f32 %v2892_v0, %v2900_v52 }
0x1d3d   : > { %v2899_v60 = vpop.xlane.xlu0 %2898 }
0x1d3e   : > { %v2901_v62 = vmul.f32 0.03125, %v2899_v60  ;;  %v2904_v57 = vmul.f32 %v2902_v54, %v2902_v54 }
0x1d40   : > { %v2903_v29 = vsub.f32 %v2893_v47, %v2901_v62  ;;  %v2906_v42 = vsel %vm513_vm2, %v2904_v57, 0.0 }
0x1d41   : > { %2907 = vadd.xlane.f32.xlu1 %v2906_v42 }
0x1d42   : > { %v2905_v49 = vmul.f32 %v2903_v29, %v2903_v29 }
0x1d44   : > { %v2909_v11 = vsel %vm513_vm2, %v2905_v49, 0.0 }
0x1d45   : > { %2910 = vadd.xlane.f32.xlu0 %v2909_v11 }
0x1dca   : > { %v2908_v2 = vpop.xlane.xlu1 %2907 }
0x1dcb   : > { %v2912_v1 = vmul.f32 0.03125, %v2908_v2 }
0x1dcd   : > { %v2914_v51 = vadd.f32 1e-06, %v2912_v1 }
0x1dce   : > { %v2911_v46 = vpop.xlane.xlu0 %2910 }
0x1dcf   : > { %3630 = vrsqrt.f32 %v2914_v51  ;;  %v2913_v63 = vmul.f32 0.03125, %v2911_v46 }
0x1dd1   : > { %v2915_v3 = vadd.f32 1e-06, %v2913_v63 }
0x1dd3   : > { %3632 = vrsqrt.f32 %v2915_v3 }
0x1ddc   : > { %v3631_v5 = vpop.eup %3630 }
0x1ddd   : > { %v2918_v59 = vmul.f32 %v3631_v5, %v2902_v54 }
0x1ddf   : > { %v2925_v16 = vmul.f32 %v3155_v26, %v2918_v59 }
0x1de0   : > { %v3633_v7 = vpop.eup %3632 }
0x1de1   : > { %v2932_v9 = vadd.f32 %v3156_v6, %v2925_v16  ;;  %v2919_v4 = vmul.f32 %v3633_v7, %v2903_v29 }
0x1de3   : > { %2934 = vst.msk [vmem:[%s432_s16] sm:$0xff] %vm513_vm2, %v2932_v9  ;;  %v2926_v10 = vmul.f32 %v3155_v26, %v2919_v4 }
0x1de5   : > { %v2933_v12 = vadd.f32 %v3156_v6, %v2926_v10 }
0x1de7   : > { %2935 = vst.msk [vmem:[%s432_s16 + $0x8] sm:$0xff] %vm513_vm2, %v2933_v12 }
0x1de8 PF: > { %s19_s30 = sadd.s32 1, %s3640_s30  }
0x1de9   : > { %p16_p4 = scmp.ge.s32.totalorder %s19_s30, 4  }
0x1deb   :  { %18 = sbr.rel (!%p16_p4) target bundleno = 1 (0x1), region = 101 }

</bundles_post_ra>
